<compile_context>
chip_gen: v6e
topology: v6e:2x2x1
jax: 0.10.0
libtpu: 0.0.40
codegen_flags: <defaults>
</compile_context>

<pallas_src>
import jax
import jax.numpy as jnp
from jax.experimental import pallas as pl
from jax.experimental.pallas import tpu as pltpu

# ----------------------------- problem sizes -----------------------------
N, CIN, H, W = 2, 3, 16, 16
COUT, KH, KW = 6, 5, 5
OH, OW = H - KH + 1, W - KW + 1            # 12, 12
P = OH * OW                                # 144 spatial positions per image
K = CIN * KH * KW                          # 75  contraction dim (+1 ones row)
HW = H * W                                 # 256 flattened image row length
SLICE_W = (OH - 1) * W + OW                # 188: window slice width (max valid col 187)
BN_EPS = 1e-5


# ------------------------------ Pallas kernel -----------------------------
def conv_bn_kernel(x_ref, w_ref, o_ref, patch_ref, res_ref):
    # x_ref:     [N, CIN, HW]   raw images, spatial dims flattened (free bitcast)
    # w_ref:     [COUT, K+1]    BN-scaled weights in (kh, kw, ci) order + bias column
    # o_ref:     [N, COUT, P]   output in NCHW-flatten order
    # patch_ref: [K+1, HW]      scratch patch matrix; column c encodes (oh, ow) = (c//W, c%W)
    # res_ref:   [COUT, HW]     scratch matmul result before column compaction
    patch_ref[...] = jnp.zeros((K + 1, HW), jnp.float32)
    # Ones row folds the (conv + BN) bias directly into the MXU contraction.
    patch_ref[pl.ds(K, 1), :] = jnp.ones((1, HW), jnp.float32)

    for n in range(N):                                   # N=2, static unroll
        # Build the patch matrix: row (kh*KW + kw)*CIN + ci, valid column oh*W + ow
        # holds x[n, ci, oh+kh, ow+kw]; a (kh, kw) window is a pure lane-offset slice.
        for kh in range(KH):
            for kw in range(KW):
                r = (kh * KW + kw) * CIN
                s = kh * W + kw                          # s + SLICE_W <= 256 always
                patch_ref[pl.ds(r, CIN), pl.ds(0, SLICE_W)] = x_ref[n, :, pl.ds(s, SLICE_W)]

        # One MXU matmul per image: [COUT, K+1] @ [K+1, 256] -> [COUT, 256] (bias included).
        res_ref[...] = jnp.dot(w_ref[...], patch_ref[...],
                               preferred_element_type=jnp.float32)

        # Compact valid columns (oh*W + ow) -> (oh*OW + ow) == NCHW flatten order.
        for oh in range(OH):
            o_ref[n, :, pl.ds(oh * OW, OW)] = res_ref[:, pl.ds(oh * W, OW)]


def conv_bn_pallas(x_flat, w_aug):
    # Grid-less single invocation: all operands are whole-array VMEM blocks (<100 KB total).
    return pl.pallas_call(
        conv_bn_kernel,
        out_shape=jax.ShapeDtypeStruct((N, COUT, P), jnp.float32),
        scratch_shapes=[
            pltpu.VMEM((K + 1, HW), jnp.float32),   # patch matrix
            pltpu.VMEM((COUT, HW), jnp.float32),    # matmul result
        ],
    )(x_flat, w_aug)


# ------------------------------- JAX glue ---------------------------------
def torch_conv_bn_forward(x, conv_w, conv_b, gamma, beta, run_mean, run_var):
    # Fold BatchNorm(eval) + conv bias: per-out-channel scale into the weights,
    # everything else into one bias column appended to the weight matrix.
    scale = gamma * jax.lax.rsqrt(run_var + BN_EPS)                # [COUT]
    bias = beta + (conv_b - run_mean) * scale                      # [COUT]
    # Weight contraction order must be (kh, kw, ci) to match the in-kernel patch rows.
    w_khwc = jnp.transpose(conv_w, (0, 2, 3, 1)).reshape(COUT, K)  # [COUT, K]
    w_aug = jnp.concatenate([w_khwc * scale[:, None], bias[:, None]], axis=1)  # [COUT, K+1]

    x_flat = x.reshape(N, CIN, HW)                                 # contiguous -> free bitcast
    out = conv_bn_pallas(x_flat, w_aug)                            # [N, COUT, P]
    # Channel-major kernel output == NCHW flatten order: view(N, -1) is free.
    return out.reshape(N, COUT * P)                                # [N, 864]


# -------------------------------- main -------------------------------------
if __name__ == "__main__":
    key = jax.random.PRNGKey(0)
    kx, kw_, kb, kg, kbe, km, kv = jax.random.split(key, 7)

    x = jax.random.normal(kx, (N, CIN, H, W), jnp.float32)
    conv_w = 0.1 * jax.random.normal(kw_, (COUT, CIN, KH, KW), jnp.float32)
    conv_b = 0.1 * jax.random.normal(kb, (COUT,), jnp.float32)
    gamma = 1.0 + 0.1 * jax.random.normal(kg, (COUT,), jnp.float32)
    beta = 0.1 * jax.random.normal(kbe, (COUT,), jnp.float32)
    run_mean = 0.1 * jax.random.normal(km, (COUT,), jnp.float32)
    run_var = jnp.abs(1.0 + 0.1 * jax.random.normal(kv, (COUT,), jnp.float32))

    out = jax.jit(torch_conv_bn_forward)(
        x, conv_w, conv_b, gamma, beta, run_mean, run_var)
    out = jax.block_until_ready(out)
    assert out.shape == (N, COUT * OH * OW), out.shape

    # Pure-JAX reference (lax conv + eval-mode BN) guarding patch/weight ordering.
    ref_conv = jax.lax.conv_general_dilated(
        x, conv_w, window_strides=(1, 1), padding="VALID",
        dimension_numbers=("NCHW", "OIHW", "NCHW")) + conv_b[None, :, None, None]
    ref = (gamma[None, :, None, None]
           * (ref_conv - run_mean[None, :, None, None])
           / jnp.sqrt(run_var[None, :, None, None] + BN_EPS)
           + beta[None, :, None, None]).reshape(N, -1)
    err = float(jnp.max(jnp.abs(out - ref)))
    assert err < 5e-4, f"max abs err {err}"

    print("KERNEL_OK")
</pallas_src>

<mosaic_0001>
module attributes {stable_mosaic.version = 11 : i64} {
  func.func @conv_bn_kernel(%arg0: memref<2x3x256xf32, #tpu.memory_space<vmem>>, %arg1: memref<6x76xf32, #tpu.memory_space<vmem>>, %arg2: memref<2x6x144xf32, #tpu.memory_space<vmem>>, %arg3: memref<76x256xf32, #tpu.memory_space<vmem>>, %arg4: memref<6x256xf32, #tpu.memory_space<vmem>>) attributes {dimension_semantics = [], scalar_prefetch = 0 : i64, scratch_operands = 2 : i64, tpu.core_type = #tpu.core_type<tc>} {
    %cst = arith.constant 0.000000e+00 : f32
    %0 = vector.broadcast %cst : f32 to vector<76x256xf32>
    %c0 = arith.constant 0 : index
    %c0_0 = arith.constant 0 : index
    %1 = vector.load %arg3[%c0, %c0_0] : memref<76x256xf32, #tpu.memory_space<vmem>>, vector<76x256xf32>
    tpu.vector_store %arg3[%c0, %c0_0], %0 {strides = array<i32>} : memref<76x256xf32, #tpu.memory_space<vmem>>, vector<76x256xf32>,
    %cst_1 = arith.constant 1.000000e+00 : f32
    %2 = vector.broadcast %cst_1 : f32 to vector<1x256xf32>
    %c75 = arith.constant 75 : index
    %c0_2 = arith.constant 0 : index
    %3 = vector.load %arg3[%c75, %c0_2] : memref<76x256xf32, #tpu.memory_space<vmem>>, vector<1x256xf32>
    tpu.vector_store %arg3[%c75, %c0_2], %2 {strides = array<i32>} : memref<76x256xf32, #tpu.memory_space<vmem>>, vector<1x256xf32>,
    %c0_3 = arith.constant 0 : index
    %c0_4 = arith.constant 0 : index
    %c0_5 = arith.constant 0 : index
    %4 = vector.load %arg0[%c0_3, %c0_4, %c0_5] : memref<2x3x256xf32, #tpu.memory_space<vmem>>, vector<1x3x188xf32>
    %5 = vector.shape_cast %4 : vector<1x3x188xf32> to vector<3x188xf32>
    %c0_6 = arith.constant 0 : index
    %c0_7 = arith.constant 0 : index
    %6 = vector.load %arg3[%c0_6, %c0_7] : memref<76x256xf32, #tpu.memory_space<vmem>>, vector<3x188xf32>
    tpu.vector_store %arg3[%c0_6, %c0_7], %5 {strides = array<i32>} : memref<76x256xf32, #tpu.memory_space<vmem>>, vector<3x188xf32>,
    %c0_8 = arith.constant 0 : index
    %c0_9 = arith.constant 0 : index
    %c1 = arith.constant 1 : index
    %7 = vector.load %arg0[%c0_8, %c0_9, %c1] : memref<2x3x256xf32, #tpu.memory_space<vmem>>, vector<1x3x188xf32>
    %8 = vector.shape_cast %7 : vector<1x3x188xf32> to vector<3x188xf32>
    %c3 = arith.constant 3 : index
    %c0_10 = arith.constant 0 : index
    %9 = vector.load %arg3[%c3, %c0_10] : memref<76x256xf32, #tpu.memory_space<vmem>>, vector<3x188xf32>
    tpu.vector_store %arg3[%c3, %c0_10], %8 {strides = array<i32>} : memref<76x256xf32, #tpu.memory_space<vmem>>, vector<3x188xf32>,
    %c0_11 = arith.constant 0 : index
    %c0_12 = arith.constant 0 : index
    %c2 = arith.constant 2 : index
    %10 = vector.load %arg0[%c0_11, %c0_12, %c2] : memref<2x3x256xf32, #tpu.memory_space<vmem>>, vector<1x3x188xf32>
    %11 = vector.shape_cast %10 : vector<1x3x188xf32> to vector<3x188xf32>
    %c6 = arith.constant 6 : index
    %c0_13 = arith.constant 0 : index
    %12 = vector.load %arg3[%c6, %c0_13] : memref<76x256xf32, #tpu.memory_space<vmem>>, vector<3x188xf32>
    tpu.vector_store %arg3[%c6, %c0_13], %11 {strides = array<i32>} : memref<76x256xf32, #tpu.memory_space<vmem>>, vector<3x188xf32>,
    %c0_14 = arith.constant 0 : index
    %c0_15 = arith.constant 0 : index
    %c3_16 = arith.constant 3 : index
    %13 = vector.load %arg0[%c0_14, %c0_15, %c3_16] : memref<2x3x256xf32, #tpu.memory_space<vmem>>, vector<1x3x188xf32>
    %14 = vector.shape_cast %13 : vector<1x3x188xf32> to vector<3x188xf32>
    %c9 = arith.constant 9 : index
    %c0_17 = arith.constant 0 : index
    %15 = vector.load %arg3[%c9, %c0_17] : memref<76x256xf32, #tpu.memory_space<vmem>>, vector<3x188xf32>
    tpu.vector_store %arg3[%c9, %c0_17], %14 {strides = array<i32>} : memref<76x256xf32, #tpu.memory_space<vmem>>, vector<3x188xf32>,
    %c0_18 = arith.constant 0 : index
    %c0_19 = arith.constant 0 : index
    %c4 = arith.constant 4 : index
    %16 = vector.load %arg0[%c0_18, %c0_19, %c4] : memref<2x3x256xf32, #tpu.memory_space<vmem>>, vector<1x3x188xf32>
    %17 = vector.shape_cast %16 : vector<1x3x188xf32> to vector<3x188xf32>
    %c12 = arith.constant 12 : index
    %c0_20 = arith.constant 0 : index
    %18 = vector.load %arg3[%c12, %c0_20] : memref<76x256xf32, #tpu.memory_space<vmem>>, vector<3x188xf32>
    tpu.vector_store %arg3[%c12, %c0_20], %17 {strides = array<i32>} : memref<76x256xf32, #tpu.memory_space<vmem>>, vector<3x188xf32>,
    %c0_21 = arith.constant 0 : index
    %c0_22 = arith.constant 0 : index
    %c16 = arith.constant 16 : index
    %19 = vector.load %arg0[%c0_21, %c0_22, %c16] : memref<2x3x256xf32, #tpu.memory_space<vmem>>, vector<1x3x188xf32>
    %20 = vector.shape_cast %19 : vector<1x3x188xf32> to vector<3x188xf32>
    %c15 = arith.constant 15 : index
    %c0_23 = arith.constant 0 : index
    %21 = vector.load %arg3[%c15, %c0_23] : memref<76x256xf32, #tpu.memory_space<vmem>>, vector<3x188xf32>
    tpu.vector_store %arg3[%c15, %c0_23], %20 {strides = array<i32>} : memref<76x256xf32, #tpu.memory_space<vmem>>, vector<3x188xf32>,
    %c0_24 = arith.constant 0 : index
    %c0_25 = arith.constant 0 : index
    %c17 = arith.constant 17 : index
    %22 = vector.load %arg0[%c0_24, %c0_25, %c17] : memref<2x3x256xf32, #tpu.memory_space<vmem>>, vector<1x3x188xf32>
    %23 = vector.shape_cast %22 : vector<1x3x188xf32> to vector<3x188xf32>
    %c18 = arith.constant 18 : index
    %c0_26 = arith.constant 0 : index
    %24 = vector.load %arg3[%c18, %c0_26] : memref<76x256xf32, #tpu.memory_space<vmem>>, vector<3x188xf32>
    tpu.vector_store %arg3[%c18, %c0_26], %23 {strides = array<i32>} : memref<76x256xf32, #tpu.memory_space<vmem>>, vector<3x188xf32>,
    %c0_27 = arith.constant 0 : index
    %c0_28 = arith.constant 0 : index
    %c18_29 = arith.constant 18 : index
    %25 = vector.load %arg0[%c0_27, %c0_28, %c18_29] : memref<2x3x256xf32, #tpu.memory_space<vmem>>, vector<1x3x188xf32>
    %26 = vector.shape_cast %25 : vector<1x3x188xf32> to vector<3x188xf32>
    %c21 = arith.constant 21 : index
    %c0_30 = arith.constant 0 : index
    %27 = vector.load %arg3[%c21, %c0_30] : memref<76x256xf32, #tpu.memory_space<vmem>>, vector<3x188xf32>
    tpu.vector_store %arg3[%c21, %c0_30], %26 {strides = array<i32>} : memref<76x256xf32, #tpu.memory_space<vmem>>, vector<3x188xf32>,
    %c0_31 = arith.constant 0 : index
    %c0_32 = arith.constant 0 : index
    %c19 = arith.constant 19 : index
    %28 = vector.load %arg0[%c0_31, %c0_32, %c19] : memref<2x3x256xf32, #tpu.memory_space<vmem>>, vector<1x3x188xf32>
    %29 = vector.shape_cast %28 : vector<1x3x188xf32> to vector<3x188xf32>
    %c24 = arith.constant 24 : index
    %c0_33 = arith.constant 0 : index
    %30 = vector.load %arg3[%c24, %c0_33] : memref<76x256xf32, #tpu.memory_space<vmem>>, vector<3x188xf32>
    tpu.vector_store %arg3[%c24, %c0_33], %29 {strides = array<i32>} : memref<76x256xf32, #tpu.memory_space<vmem>>, vector<3x188xf32>,
    %c0_34 = arith.constant 0 : index
    %c0_35 = arith.constant 0 : index
    %c20 = arith.constant 20 : index
    %31 = vector.load %arg0[%c0_34, %c0_35, %c20] : memref<2x3x256xf32, #tpu.memory_space<vmem>>, vector<1x3x188xf32>
    %32 = vector.shape_cast %31 : vector<1x3x188xf32> to vector<3x188xf32>
    %c27 = arith.constant 27 : index
    %c0_36 = arith.constant 0 : index
    %33 = vector.load %arg3[%c27, %c0_36] : memref<76x256xf32, #tpu.memory_space<vmem>>, vector<3x188xf32>
    tpu.vector_store %arg3[%c27, %c0_36], %32 {strides = array<i32>} : memref<76x256xf32, #tpu.memory_space<vmem>>, vector<3x188xf32>,
    %c0_37 = arith.constant 0 : index
    %c0_38 = arith.constant 0 : index
    %c32 = arith.constant 32 : index
    %34 = vector.load %arg0[%c0_37, %c0_38, %c32] : memref<2x3x256xf32, #tpu.memory_space<vmem>>, vector<1x3x188xf32>
    %35 = vector.shape_cast %34 : vector<1x3x188xf32> to vector<3x188xf32>
    %c30 = arith.constant 30 : index
    %c0_39 = arith.constant 0 : index
    %36 = vector.load %arg3[%c30, %c0_39] : memref<76x256xf32, #tpu.memory_space<vmem>>, vector<3x188xf32>
    tpu.vector_store %arg3[%c30, %c0_39], %35 {strides = array<i32>} : memref<76x256xf32, #tpu.memory_space<vmem>>, vector<3x188xf32>,
    %c0_40 = arith.constant 0 : index
    %c0_41 = arith.constant 0 : index
    %c33 = arith.constant 33 : index
    %37 = vector.load %arg0[%c0_40, %c0_41, %c33] : memref<2x3x256xf32, #tpu.memory_space<vmem>>, vector<1x3x188xf32>
    %38 = vector.shape_cast %37 : vector<1x3x188xf32> to vector<3x188xf32>
    %c33_42 = arith.constant 33 : index
    %c0_43 = arith.constant 0 : index
    %39 = vector.load %arg3[%c33_42, %c0_43] : memref<76x256xf32, #tpu.memory_space<vmem>>, vector<3x188xf32>
    tpu.vector_store %arg3[%c33_42, %c0_43], %38 {strides = array<i32>} : memref<76x256xf32, #tpu.memory_space<vmem>>, vector<3x188xf32>,
    %c0_44 = arith.constant 0 : index
    %c0_45 = arith.constant 0 : index
    %c34 = arith.constant 34 : index
    %40 = vector.load %arg0[%c0_44, %c0_45, %c34] : memref<2x3x256xf32, #tpu.memory_space<vmem>>, vector<1x3x188xf32>
    %41 = vector.shape_cast %40 : vector<1x3x188xf32> to vector<3x188xf32>
    %c36 = arith.constant 36 : index
    %c0_46 = arith.constant 0 : index
    %42 = vector.load %arg3[%c36, %c0_46] : memref<76x256xf32, #tpu.memory_space<vmem>>, vector<3x188xf32>
    tpu.vector_store %arg3[%c36, %c0_46], %41 {strides = array<i32>} : memref<76x256xf32, #tpu.memory_space<vmem>>, vector<3x188xf32>,
    %c0_47 = arith.constant 0 : index
    %c0_48 = arith.constant 0 : index
    %c35 = arith.constant 35 : index
    %43 = vector.load %arg0[%c0_47, %c0_48, %c35] : memref<2x3x256xf32, #tpu.memory_space<vmem>>, vector<1x3x188xf32>
    %44 = vector.shape_cast %43 : vector<1x3x188xf32> to vector<3x188xf32>
    %c39 = arith.constant 39 : index
    %c0_49 = arith.constant 0 : index
    %45 = vector.load %arg3[%c39, %c0_49] : memref<76x256xf32, #tpu.memory_space<vmem>>, vector<3x188xf32>
    tpu.vector_store %arg3[%c39, %c0_49], %44 {strides = array<i32>} : memref<76x256xf32, #tpu.memory_space<vmem>>, vector<3x188xf32>,
    %c0_50 = arith.constant 0 : index
    %c0_51 = arith.constant 0 : index
    %c36_52 = arith.constant 36 : index
    %46 = vector.load %arg0[%c0_50, %c0_51, %c36_52] : memref<2x3x256xf32, #tpu.memory_space<vmem>>, vector<1x3x188xf32>
    %47 = vector.shape_cast %46 : vector<1x3x188xf32> to vector<3x188xf32>
    %c42 = arith.constant 42 : index
    %c0_53 = arith.constant 0 : index
    %48 = vector.load %arg3[%c42, %c0_53] : memref<76x256xf32, #tpu.memory_space<vmem>>, vector<3x188xf32>
    tpu.vector_store %arg3[%c42, %c0_53], %47 {strides = array<i32>} : memref<76x256xf32, #tpu.memory_space<vmem>>, vector<3x188xf32>,
    %c0_54 = arith.constant 0 : index
    %c0_55 = arith.constant 0 : index
    %c48 = arith.constant 48 : index
    %49 = vector.load %arg0[%c0_54, %c0_55, %c48] : memref<2x3x256xf32, #tpu.memory_space<vmem>>, vector<1x3x188xf32>
    %50 = vector.shape_cast %49 : vector<1x3x188xf32> to vector<3x188xf32>
    %c45 = arith.constant 45 : index
    %c0_56 = arith.constant 0 : index
    %51 = vector.load %arg3[%c45, %c0_56] : memref<76x256xf32, #tpu.memory_space<vmem>>, vector<3x188xf32>
    tpu.vector_store %arg3[%c45, %c0_56], %50 {strides = array<i32>} : memref<76x256xf32, #tpu.memory_space<vmem>>, vector<3x188xf32>,
    %c0_57 = arith.constant 0 : index
    %c0_58 = arith.constant 0 : index
    %c49 = arith.constant 49 : index
    %52 = vector.load %arg0[%c0_57, %c0_58, %c49] : memref<2x3x256xf32, #tpu.memory_space<vmem>>, vector<1x3x188xf32>
    %53 = vector.shape_cast %52 : vector<1x3x188xf32> to vector<3x188xf32>
    %c48_59 = arith.constant 48 : index
    %c0_60 = arith.constant 0 : index
    %54 = vector.load %arg3[%c48_59, %c0_60] : memref<76x256xf32, #tpu.memory_space<vmem>>, vector<3x188xf32>
    tpu.vector_store %arg3[%c48_59, %c0_60], %53 {strides = array<i32>} : memref<76x256xf32, #tpu.memory_space<vmem>>, vector<3x188xf32>,
    %c0_61 = arith.constant 0 : index
    %c0_62 = arith.constant 0 : index
    %c50 = arith.constant 50 : index
    %55 = vector.load %arg0[%c0_61, %c0_62, %c50] : memref<2x3x256xf32, #tpu.memory_space<vmem>>, vector<1x3x188xf32>
    %56 = vector.shape_cast %55 : vector<1x3x188xf32> to vector<3x188xf32>
    %c51 = arith.constant 51 : index
    %c0_63 = arith.constant 0 : index
    %57 = vector.load %arg3[%c51, %c0_63] : memref<76x256xf32, #tpu.memory_space<vmem>>, vector<3x188xf32>
    tpu.vector_store %arg3[%c51, %c0_63], %56 {strides = array<i32>} : memref<76x256xf32, #tpu.memory_space<vmem>>, vector<3x188xf32>,
    %c0_64 = arith.constant 0 : index
    %c0_65 = arith.constant 0 : index
    %c51_66 = arith.constant 51 : index
    %58 = vector.load %arg0[%c0_64, %c0_65, %c51_66] : memref<2x3x256xf32, #tpu.memory_space<vmem>>, vector<1x3x188xf32>
    %59 = vector.shape_cast %58 : vector<1x3x188xf32> to vector<3x188xf32>
    %c54 = arith.constant 54 : index
    %c0_67 = arith.constant 0 : index
    %60 = vector.load %arg3[%c54, %c0_67] : memref<76x256xf32, #tpu.memory_space<vmem>>, vector<3x188xf32>
    tpu.vector_store %arg3[%c54, %c0_67], %59 {strides = array<i32>} : memref<76x256xf32, #tpu.memory_space<vmem>>, vector<3x188xf32>,
    %c0_68 = arith.constant 0 : index
    %c0_69 = arith.constant 0 : index
    %c52 = arith.constant 52 : index
    %61 = vector.load %arg0[%c0_68, %c0_69, %c52] : memref<2x3x256xf32, #tpu.memory_space<vmem>>, vector<1x3x188xf32>
    %62 = vector.shape_cast %61 : vector<1x3x188xf32> to vector<3x188xf32>
    %c57 = arith.constant 57 : index
    %c0_70 = arith.constant 0 : index
    %63 = vector.load %arg3[%c57, %c0_70] : memref<76x256xf32, #tpu.memory_space<vmem>>, vector<3x188xf32>
    tpu.vector_store %arg3[%c57, %c0_70], %62 {strides = array<i32>} : memref<76x256xf32, #tpu.memory_space<vmem>>, vector<3x188xf32>,
    %c0_71 = arith.constant 0 : index
    %c0_72 = arith.constant 0 : index
    %c64 = arith.constant 64 : index
    %64 = vector.load %arg0[%c0_71, %c0_72, %c64] : memref<2x3x256xf32, #tpu.memory_space<vmem>>, vector<1x3x188xf32>
    %65 = vector.shape_cast %64 : vector<1x3x188xf32> to vector<3x188xf32>
    %c60 = arith.constant 60 : index
    %c0_73 = arith.constant 0 : index
    %66 = vector.load %arg3[%c60, %c0_73] : memref<76x256xf32, #tpu.memory_space<vmem>>, vector<3x188xf32>
    tpu.vector_store %arg3[%c60, %c0_73], %65 {strides = array<i32>} : memref<76x256xf32, #tpu.memory_space<vmem>>, vector<3x188xf32>,
    %c0_74 = arith.constant 0 : index
    %c0_75 = arith.constant 0 : index
    %c65 = arith.constant 65 : index
    %67 = vector.load %arg0[%c0_74, %c0_75, %c65] : memref<2x3x256xf32, #tpu.memory_space<vmem>>, vector<1x3x188xf32>
    %68 = vector.shape_cast %67 : vector<1x3x188xf32> to vector<3x188xf32>
    %c63 = arith.constant 63 : index
    %c0_76 = arith.constant 0 : index
    %69 = vector.load %arg3[%c63, %c0_76] : memref<76x256xf32, #tpu.memory_space<vmem>>, vector<3x188xf32>
    tpu.vector_store %arg3[%c63, %c0_76], %68 {strides = array<i32>} : memref<76x256xf32, #tpu.memory_space<vmem>>, vector<3x188xf32>,
    %c0_77 = arith.constant 0 : index
    %c0_78 = arith.constant 0 : index
    %c66 = arith.constant 66 : index
    %70 = vector.load %arg0[%c0_77, %c0_78, %c66] : memref<2x3x256xf32, #tpu.memory_space<vmem>>, vector<1x3x188xf32>
    %71 = vector.shape_cast %70 : vector<1x3x188xf32> to vector<3x188xf32>
    %c66_79 = arith.constant 66 : index
    %c0_80 = arith.constant 0 : index
    %72 = vector.load %arg3[%c66_79, %c0_80] : memref<76x256xf32, #tpu.memory_space<vmem>>, vector<3x188xf32>
    tpu.vector_store %arg3[%c66_79, %c0_80], %71 {strides = array<i32>} : memref<76x256xf32, #tpu.memory_space<vmem>>, vector<3x188xf32>,
    %c0_81 = arith.constant 0 : index
    %c0_82 = arith.constant 0 : index
    %c67 = arith.constant 67 : index
    %73 = vector.load %arg0[%c0_81, %c0_82, %c67] : memref<2x3x256xf32, #tpu.memory_space<vmem>>, vector<1x3x188xf32>
    %74 = vector.shape_cast %73 : vector<1x3x188xf32> to vector<3x188xf32>
    %c69 = arith.constant 69 : index
    %c0_83 = arith.constant 0 : index
    %75 = vector.load %arg3[%c69, %c0_83] : memref<76x256xf32, #tpu.memory_space<vmem>>, vector<3x188xf32>
    tpu.vector_store %arg3[%c69, %c0_83], %74 {strides = array<i32>} : memref<76x256xf32, #tpu.memory_space<vmem>>, vector<3x188xf32>,
    %c0_84 = arith.constant 0 : index
    %c0_85 = arith.constant 0 : index
    %c68 = arith.constant 68 : index
    %76 = vector.load %arg0[%c0_84, %c0_85, %c68] : memref<2x3x256xf32, #tpu.memory_space<vmem>>, vector<1x3x188xf32>
    %77 = vector.shape_cast %76 : vector<1x3x188xf32> to vector<3x188xf32>
    %c72 = arith.constant 72 : index
    %c0_86 = arith.constant 0 : index
    %78 = vector.load %arg3[%c72, %c0_86] : memref<76x256xf32, #tpu.memory_space<vmem>>, vector<3x188xf32>
    tpu.vector_store %arg3[%c72, %c0_86], %77 {strides = array<i32>} : memref<76x256xf32, #tpu.memory_space<vmem>>, vector<3x188xf32>,
    %c0_87 = arith.constant 0 : index
    %c0_88 = arith.constant 0 : index
    %79 = vector.load %arg1[%c0_87, %c0_88] : memref<6x76xf32, #tpu.memory_space<vmem>>, vector<6x76xf32>
    %c0_89 = arith.constant 0 : index
    %c0_90 = arith.constant 0 : index
    %80 = vector.load %arg3[%c0_89, %c0_90] : memref<76x256xf32, #tpu.memory_space<vmem>>, vector<76x256xf32>
    %cst_91 = arith.constant dense<0.000000e+00> : vector<6x256xf32>
    %81 = tpu.matmul %79, %80, %cst_91 {dimension_numbers = #tpu.dot_dimension_numbers<[1], [0], [0], [1], [0, 0, 1, 1], [], []>} : vector<6x76xf32>, vector<76x256xf32>, vector<6x256xf32> -> vector<6x256xf32>
    %c0_92 = arith.constant 0 : index
    %c0_93 = arith.constant 0 : index
    %82 = vector.load %arg4[%c0_92, %c0_93] : memref<6x256xf32, #tpu.memory_space<vmem>>, vector<6x256xf32>
    tpu.vector_store %arg4[%c0_92, %c0_93], %81 {strides = array<i32>} : memref<6x256xf32, #tpu.memory_space<vmem>>, vector<6x256xf32>,
    %c0_94 = arith.constant 0 : index
    %c0_95 = arith.constant 0 : index
    %83 = vector.load %arg4[%c0_94, %c0_95] : memref<6x256xf32, #tpu.memory_space<vmem>>, vector<6x12xf32>
    %c0_96 = arith.constant 0 : index
    %c0_97 = arith.constant 0 : index
    %c0_98 = arith.constant 0 : index
    %84 = vector.load %arg2[%c0_96, %c0_97, %c0_98] : memref<2x6x144xf32, #tpu.memory_space<vmem>>, vector<1x6x12xf32>
    %85 = vector.shape_cast %84 : vector<1x6x12xf32> to vector<6x12xf32>
    %86 = vector.shape_cast %83 : vector<6x12xf32> to vector<1x6x12xf32>
    tpu.vector_store %arg2[%c0_96, %c0_97, %c0_98], %86 {strides = array<i32>} : memref<2x6x144xf32, #tpu.memory_space<vmem>>, vector<1x6x12xf32>,
    %c0_99 = arith.constant 0 : index
    %c16_100 = arith.constant 16 : index
    %87 = vector.load %arg4[%c0_99, %c16_100] : memref<6x256xf32, #tpu.memory_space<vmem>>, vector<6x12xf32>
    %c0_101 = arith.constant 0 : index
    %c0_102 = arith.constant 0 : index
    %c12_103 = arith.constant 12 : index
    %88 = vector.load %arg2[%c0_101, %c0_102, %c12_103] : memref<2x6x144xf32, #tpu.memory_space<vmem>>, vector<1x6x12xf32>
    %89 = vector.shape_cast %88 : vector<1x6x12xf32> to vector<6x12xf32>
    %90 = vector.shape_cast %87 : vector<6x12xf32> to vector<1x6x12xf32>
    tpu.vector_store %arg2[%c0_101, %c0_102, %c12_103], %90 {strides = array<i32>} : memref<2x6x144xf32, #tpu.memory_space<vmem>>, vector<1x6x12xf32>,
    %c0_104 = arith.constant 0 : index
    %c32_105 = arith.constant 32 : index
    %91 = vector.load %arg4[%c0_104, %c32_105] : memref<6x256xf32, #tpu.memory_space<vmem>>, vector<6x12xf32>
    %c0_106 = arith.constant 0 : index
    %c0_107 = arith.constant 0 : index
    %c24_108 = arith.constant 24 : index
    %92 = vector.load %arg2[%c0_106, %c0_107, %c24_108] : memref<2x6x144xf32, #tpu.memory_space<vmem>>, vector<1x6x12xf32>
    %93 = vector.shape_cast %92 : vector<1x6x12xf32> to vector<6x12xf32>
    %94 = vector.shape_cast %91 : vector<6x12xf32> to vector<1x6x12xf32>
    tpu.vector_store %arg2[%c0_106, %c0_107, %c24_108], %94 {strides = array<i32>} : memref<2x6x144xf32, #tpu.memory_space<vmem>>, vector<1x6x12xf32>,
    %c0_109 = arith.constant 0 : index
    %c48_110 = arith.constant 48 : index
    %95 = vector.load %arg4[%c0_109, %c48_110] : memref<6x256xf32, #tpu.memory_space<vmem>>, vector<6x12xf32>
    %c0_111 = arith.constant 0 : index
    %c0_112 = arith.constant 0 : index
    %c36_113 = arith.constant 36 : index
    %96 = vector.load %arg2[%c0_111, %c0_112, %c36_113] : memref<2x6x144xf32, #tpu.memory_space<vmem>>, vector<1x6x12xf32>
    %97 = vector.shape_cast %96 : vector<1x6x12xf32> to vector<6x12xf32>
    %98 = vector.shape_cast %95 : vector<6x12xf32> to vector<1x6x12xf32>
    tpu.vector_store %arg2[%c0_111, %c0_112, %c36_113], %98 {strides = array<i32>} : memref<2x6x144xf32, #tpu.memory_space<vmem>>, vector<1x6x12xf32>,
    %c0_114 = arith.constant 0 : index
    %c64_115 = arith.constant 64 : index
    %99 = vector.load %arg4[%c0_114, %c64_115] : memref<6x256xf32, #tpu.memory_space<vmem>>, vector<6x12xf32>
    %c0_116 = arith.constant 0 : index
    %c0_117 = arith.constant 0 : index
    %c48_118 = arith.constant 48 : index
    %100 = vector.load %arg2[%c0_116, %c0_117, %c48_118] : memref<2x6x144xf32, #tpu.memory_space<vmem>>, vector<1x6x12xf32>
    %101 = vector.shape_cast %100 : vector<1x6x12xf32> to vector<6x12xf32>
    %102 = vector.shape_cast %99 : vector<6x12xf32> to vector<1x6x12xf32>
    tpu.vector_store %arg2[%c0_116, %c0_117, %c48_118], %102 {strides = array<i32>} : memref<2x6x144xf32, #tpu.memory_space<vmem>>, vector<1x6x12xf32>,
    %c0_119 = arith.constant 0 : index
    %c80 = arith.constant 80 : index
    %103 = vector.load %arg4[%c0_119, %c80] : memref<6x256xf32, #tpu.memory_space<vmem>>, vector<6x12xf32>
    %c0_120 = arith.constant 0 : index
    %c0_121 = arith.constant 0 : index
    %c60_122 = arith.constant 60 : index
    %104 = vector.load %arg2[%c0_120, %c0_121, %c60_122] : memref<2x6x144xf32, #tpu.memory_space<vmem>>, vector<1x6x12xf32>
    %105 = vector.shape_cast %104 : vector<1x6x12xf32> to vector<6x12xf32>
    %106 = vector.shape_cast %103 : vector<6x12xf32> to vector<1x6x12xf32>
    tpu.vector_store %arg2[%c0_120, %c0_121, %c60_122], %106 {strides = array<i32>} : memref<2x6x144xf32, #tpu.memory_space<vmem>>, vector<1x6x12xf32>,
    %c0_123 = arith.constant 0 : index
    %c96 = arith.constant 96 : index
    %107 = vector.load %arg4[%c0_123, %c96] : memref<6x256xf32, #tpu.memory_space<vmem>>, vector<6x12xf32>
    %c0_124 = arith.constant 0 : index
    %c0_125 = arith.constant 0 : index
    %c72_126 = arith.constant 72 : index
    %108 = vector.load %arg2[%c0_124, %c0_125, %c72_126] : memref<2x6x144xf32, #tpu.memory_space<vmem>>, vector<1x6x12xf32>
    %109 = vector.shape_cast %108 : vector<1x6x12xf32> to vector<6x12xf32>
    %110 = vector.shape_cast %107 : vector<6x12xf32> to vector<1x6x12xf32>
    tpu.vector_store %arg2[%c0_124, %c0_125, %c72_126], %110 {strides = array<i32>} : memref<2x6x144xf32, #tpu.memory_space<vmem>>, vector<1x6x12xf32>,
    %c0_127 = arith.constant 0 : index
    %c112 = arith.constant 112 : index
    %111 = vector.load %arg4[%c0_127, %c112] : memref<6x256xf32, #tpu.memory_space<vmem>>, vector<6x12xf32>
    %c0_128 = arith.constant 0 : index
    %c0_129 = arith.constant 0 : index
    %c84 = arith.constant 84 : index
    %112 = vector.load %arg2[%c0_128, %c0_129, %c84] : memref<2x6x144xf32, #tpu.memory_space<vmem>>, vector<1x6x12xf32>
    %113 = vector.shape_cast %112 : vector<1x6x12xf32> to vector<6x12xf32>
    %114 = vector.shape_cast %111 : vector<6x12xf32> to vector<1x6x12xf32>
    tpu.vector_store %arg2[%c0_128, %c0_129, %c84], %114 {strides = array<i32>} : memref<2x6x144xf32, #tpu.memory_space<vmem>>, vector<1x6x12xf32>,
    %c0_130 = arith.constant 0 : index
    %c128 = arith.constant 128 : index
    %115 = vector.load %arg4[%c0_130, %c128] : memref<6x256xf32, #tpu.memory_space<vmem>>, vector<6x12xf32>
    %c0_131 = arith.constant 0 : index
    %c0_132 = arith.constant 0 : index
    %c96_133 = arith.constant 96 : index
    %116 = vector.load %arg2[%c0_131, %c0_132, %c96_133] : memref<2x6x144xf32, #tpu.memory_space<vmem>>, vector<1x6x12xf32>
    %117 = vector.shape_cast %116 : vector<1x6x12xf32> to vector<6x12xf32>
    %118 = vector.shape_cast %115 : vector<6x12xf32> to vector<1x6x12xf32>
    tpu.vector_store %arg2[%c0_131, %c0_132, %c96_133], %118 {strides = array<i32>} : memref<2x6x144xf32, #tpu.memory_space<vmem>>, vector<1x6x12xf32>,
    %c0_134 = arith.constant 0 : index
    %c144 = arith.constant 144 : index
    %119 = vector.load %arg4[%c0_134, %c144] : memref<6x256xf32, #tpu.memory_space<vmem>>, vector<6x12xf32>
    %c0_135 = arith.constant 0 : index
    %c0_136 = arith.constant 0 : index
    %c108 = arith.constant 108 : index
    %120 = vector.load %arg2[%c0_135, %c0_136, %c108] : memref<2x6x144xf32, #tpu.memory_space<vmem>>, vector<1x6x12xf32>
    %121 = vector.shape_cast %120 : vector<1x6x12xf32> to vector<6x12xf32>
    %122 = vector.shape_cast %119 : vector<6x12xf32> to vector<1x6x12xf32>
    tpu.vector_store %arg2[%c0_135, %c0_136, %c108], %122 {strides = array<i32>} : memref<2x6x144xf32, #tpu.memory_space<vmem>>, vector<1x6x12xf32>,
    %c0_137 = arith.constant 0 : index
    %c160 = arith.constant 160 : index
    %123 = vector.load %arg4[%c0_137, %c160] : memref<6x256xf32, #tpu.memory_space<vmem>>, vector<6x12xf32>
    %c0_138 = arith.constant 0 : index
    %c0_139 = arith.constant 0 : index
    %c120 = arith.constant 120 : index
    %124 = vector.load %arg2[%c0_138, %c0_139, %c120] : memref<2x6x144xf32, #tpu.memory_space<vmem>>, vector<1x6x12xf32>
    %125 = vector.shape_cast %124 : vector<1x6x12xf32> to vector<6x12xf32>
    %126 = vector.shape_cast %123 : vector<6x12xf32> to vector<1x6x12xf32>
    tpu.vector_store %arg2[%c0_138, %c0_139, %c120], %126 {strides = array<i32>} : memref<2x6x144xf32, #tpu.memory_space<vmem>>, vector<1x6x12xf32>,
    %c0_140 = arith.constant 0 : index
    %c176 = arith.constant 176 : index
    %127 = vector.load %arg4[%c0_140, %c176] : memref<6x256xf32, #tpu.memory_space<vmem>>, vector<6x12xf32>
    %c0_141 = arith.constant 0 : index
    %c0_142 = arith.constant 0 : index
    %c132 = arith.constant 132 : index
    %128 = vector.load %arg2[%c0_141, %c0_142, %c132] : memref<2x6x144xf32, #tpu.memory_space<vmem>>, vector<1x6x12xf32>
    %129 = vector.shape_cast %128 : vector<1x6x12xf32> to vector<6x12xf32>
    %130 = vector.shape_cast %127 : vector<6x12xf32> to vector<1x6x12xf32>
    tpu.vector_store %arg2[%c0_141, %c0_142, %c132], %130 {strides = array<i32>} : memref<2x6x144xf32, #tpu.memory_space<vmem>>, vector<1x6x12xf32>,
    %c1_143 = arith.constant 1 : index
    %c0_144 = arith.constant 0 : index
    %c0_145 = arith.constant 0 : index
    %131 = vector.load %arg0[%c1_143, %c0_144, %c0_145] : memref<2x3x256xf32, #tpu.memory_space<vmem>>, vector<1x3x188xf32>
    %132 = vector.shape_cast %131 : vector<1x3x188xf32> to vector<3x188xf32>
    %c0_146 = arith.constant 0 : index
    %c0_147 = arith.constant 0 : index
    %133 = vector.load %arg3[%c0_146, %c0_147] : memref<76x256xf32, #tpu.memory_space<vmem>>, vector<3x188xf32>
    tpu.vector_store %arg3[%c0_146, %c0_147], %132 {strides = array<i32>} : memref<76x256xf32, #tpu.memory_space<vmem>>, vector<3x188xf32>,
    %c1_148 = arith.constant 1 : index
    %c0_149 = arith.constant 0 : index
    %c1_150 = arith.constant 1 : index
    %134 = vector.load %arg0[%c1_148, %c0_149, %c1_150] : memref<2x3x256xf32, #tpu.memory_space<vmem>>, vector<1x3x188xf32>
    %135 = vector.shape_cast %134 : vector<1x3x188xf32> to vector<3x188xf32>
    %c3_151 = arith.constant 3 : index
    %c0_152 = arith.constant 0 : index
    %136 = vector.load %arg3[%c3_151, %c0_152] : memref<76x256xf32, #tpu.memory_space<vmem>>, vector<3x188xf32>
    tpu.vector_store %arg3[%c3_151, %c0_152], %135 {strides = array<i32>} : memref<76x256xf32, #tpu.memory_space<vmem>>, vector<3x188xf32>,
    %c1_153 = arith.constant 1 : index
    %c0_154 = arith.constant 0 : index
    %c2_155 = arith.constant 2 : index
    %137 = vector.load %arg0[%c1_153, %c0_154, %c2_155] : memref<2x3x256xf32, #tpu.memory_space<vmem>>, vector<1x3x188xf32>
    %138 = vector.shape_cast %137 : vector<1x3x188xf32> to vector<3x188xf32>
    %c6_156 = arith.constant 6 : index
    %c0_157 = arith.constant 0 : index
    %139 = vector.load %arg3[%c6_156, %c0_157] : memref<76x256xf32, #tpu.memory_space<vmem>>, vector<3x188xf32>
    tpu.vector_store %arg3[%c6_156, %c0_157], %138 {strides = array<i32>} : memref<76x256xf32, #tpu.memory_space<vmem>>, vector<3x188xf32>,
    %c1_158 = arith.constant 1 : index
    %c0_159 = arith.constant 0 : index
    %c3_160 = arith.constant 3 : index
    %140 = vector.load %arg0[%c1_158, %c0_159, %c3_160] : memref<2x3x256xf32, #tpu.memory_space<vmem>>, vector<1x3x188xf32>
    %141 = vector.shape_cast %140 : vector<1x3x188xf32> to vector<3x188xf32>
    %c9_161 = arith.constant 9 : index
    %c0_162 = arith.constant 0 : index
    %142 = vector.load %arg3[%c9_161, %c0_162] : memref<76x256xf32, #tpu.memory_space<vmem>>, vector<3x188xf32>
    tpu.vector_store %arg3[%c9_161, %c0_162], %141 {strides = array<i32>} : memref<76x256xf32, #tpu.memory_space<vmem>>, vector<3x188xf32>,
    %c1_163 = arith.constant 1 : index
    %c0_164 = arith.constant 0 : index
    %c4_165 = arith.constant 4 : index
    %143 = vector.load %arg0[%c1_163, %c0_164, %c4_165] : memref<2x3x256xf32, #tpu.memory_space<vmem>>, vector<1x3x188xf32>
    %144 = vector.shape_cast %143 : vector<1x3x188xf32> to vector<3x188xf32>
    %c12_166 = arith.constant 12 : index
    %c0_167 = arith.constant 0 : index
    %145 = vector.load %arg3[%c12_166, %c0_167] : memref<76x256xf32, #tpu.memory_space<vmem>>, vector<3x188xf32>
    tpu.vector_store %arg3[%c12_166, %c0_167], %144 {strides = array<i32>} : memref<76x256xf32, #tpu.memory_space<vmem>>, vector<3x188xf32>,
    %c1_168 = arith.constant 1 : index
    %c0_169 = arith.constant 0 : index
    %c16_170 = arith.constant 16 : index
    %146 = vector.load %arg0[%c1_168, %c0_169, %c16_170] : memref<2x3x256xf32, #tpu.memory_space<vmem>>, vector<1x3x188xf32>
    %147 = vector.shape_cast %146 : vector<1x3x188xf32> to vector<3x188xf32>
    %c15_171 = arith.constant 15 : index
    %c0_172 = arith.constant 0 : index
    %148 = vector.load %arg3[%c15_171, %c0_172] : memref<76x256xf32, #tpu.memory_space<vmem>>, vector<3x188xf32>
    tpu.vector_store %arg3[%c15_171, %c0_172], %147 {strides = array<i32>} : memref<76x256xf32, #tpu.memory_space<vmem>>, vector<3x188xf32>,
    %c1_173 = arith.constant 1 : index
    %c0_174 = arith.constant 0 : index
    %c17_175 = arith.constant 17 : index
    %149 = vector.load %arg0[%c1_173, %c0_174, %c17_175] : memref<2x3x256xf32, #tpu.memory_space<vmem>>, vector<1x3x188xf32>
    %150 = vector.shape_cast %149 : vector<1x3x188xf32> to vector<3x188xf32>
    %c18_176 = arith.constant 18 : index
    %c0_177 = arith.constant 0 : index
    %151 = vector.load %arg3[%c18_176, %c0_177] : memref<76x256xf32, #tpu.memory_space<vmem>>, vector<3x188xf32>
    tpu.vector_store %arg3[%c18_176, %c0_177], %150 {strides = array<i32>} : memref<76x256xf32, #tpu.memory_space<vmem>>, vector<3x188xf32>,
    %c1_178 = arith.constant 1 : index
    %c0_179 = arith.constant 0 : index
    %c18_180 = arith.constant 18 : index
    %152 = vector.load %arg0[%c1_178, %c0_179, %c18_180] : memref<2x3x256xf32, #tpu.memory_space<vmem>>, vector<1x3x188xf32>
    %153 = vector.shape_cast %152 : vector<1x3x188xf32> to vector<3x188xf32>
    %c21_181 = arith.constant 21 : index
    %c0_182 = arith.constant 0 : index
    %154 = vector.load %arg3[%c21_181, %c0_182] : memref<76x256xf32, #tpu.memory_space<vmem>>, vector<3x188xf32>
    tpu.vector_store %arg3[%c21_181, %c0_182], %153 {strides = array<i32>} : memref<76x256xf32, #tpu.memory_space<vmem>>, vector<3x188xf32>,
    %c1_183 = arith.constant 1 : index
    %c0_184 = arith.constant 0 : index
    %c19_185 = arith.constant 19 : index
    %155 = vector.load %arg0[%c1_183, %c0_184, %c19_185] : memref<2x3x256xf32, #tpu.memory_space<vmem>>, vector<1x3x188xf32>
    %156 = vector.shape_cast %155 : vector<1x3x188xf32> to vector<3x188xf32>
    %c24_186 = arith.constant 24 : index
    %c0_187 = arith.constant 0 : index
    %157 = vector.load %arg3[%c24_186, %c0_187] : memref<76x256xf32, #tpu.memory_space<vmem>>, vector<3x188xf32>
    tpu.vector_store %arg3[%c24_186, %c0_187], %156 {strides = array<i32>} : memref<76x256xf32, #tpu.memory_space<vmem>>, vector<3x188xf32>,
    %c1_188 = arith.constant 1 : index
    %c0_189 = arith.constant 0 : index
    %c20_190 = arith.constant 20 : index
    %158 = vector.load %arg0[%c1_188, %c0_189, %c20_190] : memref<2x3x256xf32, #tpu.memory_space<vmem>>, vector<1x3x188xf32>
    %159 = vector.shape_cast %158 : vector<1x3x188xf32> to vector<3x188xf32>
    %c27_191 = arith.constant 27 : index
    %c0_192 = arith.constant 0 : index
    %160 = vector.load %arg3[%c27_191, %c0_192] : memref<76x256xf32, #tpu.memory_space<vmem>>, vector<3x188xf32>
    tpu.vector_store %arg3[%c27_191, %c0_192], %159 {strides = array<i32>} : memref<76x256xf32, #tpu.memory_space<vmem>>, vector<3x188xf32>,
    %c1_193 = arith.constant 1 : index
    %c0_194 = arith.constant 0 : index
    %c32_195 = arith.constant 32 : index
    %161 = vector.load %arg0[%c1_193, %c0_194, %c32_195] : memref<2x3x256xf32, #tpu.memory_space<vmem>>, vector<1x3x188xf32>
    %162 = vector.shape_cast %161 : vector<1x3x188xf32> to vector<3x188xf32>
    %c30_196 = arith.constant 30 : index
    %c0_197 = arith.constant 0 : index
    %163 = vector.load %arg3[%c30_196, %c0_197] : memref<76x256xf32, #tpu.memory_space<vmem>>, vector<3x188xf32>
    tpu.vector_store %arg3[%c30_196, %c0_197], %162 {strides = array<i32>} : memref<76x256xf32, #tpu.memory_space<vmem>>, vector<3x188xf32>,
    %c1_198 = arith.constant 1 : index
    %c0_199 = arith.constant 0 : index
    %c33_200 = arith.constant 33 : index
    %164 = vector.load %arg0[%c1_198, %c0_199, %c33_200] : memref<2x3x256xf32, #tpu.memory_space<vmem>>, vector<1x3x188xf32>
    %165 = vector.shape_cast %164 : vector<1x3x188xf32> to vector<3x188xf32>
    %c33_201 = arith.constant 33 : index
    %c0_202 = arith.constant 0 : index
    %166 = vector.load %arg3[%c33_201, %c0_202] : memref<76x256xf32, #tpu.memory_space<vmem>>, vector<3x188xf32>
    tpu.vector_store %arg3[%c33_201, %c0_202], %165 {strides = array<i32>} : memref<76x256xf32, #tpu.memory_space<vmem>>, vector<3x188xf32>,
    %c1_203 = arith.constant 1 : index
    %c0_204 = arith.constant 0 : index
    %c34_205 = arith.constant 34 : index
    %167 = vector.load %arg0[%c1_203, %c0_204, %c34_205] : memref<2x3x256xf32, #tpu.memory_space<vmem>>, vector<1x3x188xf32>
    %168 = vector.shape_cast %167 : vector<1x3x188xf32> to vector<3x188xf32>
    %c36_206 = arith.constant 36 : index
    %c0_207 = arith.constant 0 : index
    %169 = vector.load %arg3[%c36_206, %c0_207] : memref<76x256xf32, #tpu.memory_space<vmem>>, vector<3x188xf32>
    tpu.vector_store %arg3[%c36_206, %c0_207], %168 {strides = array<i32>} : memref<76x256xf32, #tpu.memory_space<vmem>>, vector<3x188xf32>,
    %c1_208 = arith.constant 1 : index
    %c0_209 = arith.constant 0 : index
    %c35_210 = arith.constant 35 : index
    %170 = vector.load %arg0[%c1_208, %c0_209, %c35_210] : memref<2x3x256xf32, #tpu.memory_space<vmem>>, vector<1x3x188xf32>
    %171 = vector.shape_cast %170 : vector<1x3x188xf32> to vector<3x188xf32>
    %c39_211 = arith.constant 39 : index
    %c0_212 = arith.constant 0 : index
    %172 = vector.load %arg3[%c39_211, %c0_212] : memref<76x256xf32, #tpu.memory_space<vmem>>, vector<3x188xf32>
    tpu.vector_store %arg3[%c39_211, %c0_212], %171 {strides = array<i32>} : memref<76x256xf32, #tpu.memory_space<vmem>>, vector<3x188xf32>,
    %c1_213 = arith.constant 1 : index
    %c0_214 = arith.constant 0 : index
    %c36_215 = arith.constant 36 : index
    %173 = vector.load %arg0[%c1_213, %c0_214, %c36_215] : memref<2x3x256xf32, #tpu.memory_space<vmem>>, vector<1x3x188xf32>
    %174 = vector.shape_cast %173 : vector<1x3x188xf32> to vector<3x188xf32>
    %c42_216 = arith.constant 42 : index
    %c0_217 = arith.constant 0 : index
    %175 = vector.load %arg3[%c42_216, %c0_217] : memref<76x256xf32, #tpu.memory_space<vmem>>, vector<3x188xf32>
    tpu.vector_store %arg3[%c42_216, %c0_217], %174 {strides = array<i32>} : memref<76x256xf32, #tpu.memory_space<vmem>>, vector<3x188xf32>,
    %c1_218 = arith.constant 1 : index
    %c0_219 = arith.constant 0 : index
    %c48_220 = arith.constant 48 : index
    %176 = vector.load %arg0[%c1_218, %c0_219, %c48_220] : memref<2x3x256xf32, #tpu.memory_space<vmem>>, vector<1x3x188xf32>
    %177 = vector.shape_cast %176 : vector<1x3x188xf32> to vector<3x188xf32>
    %c45_221 = arith.constant 45 : index
    %c0_222 = arith.constant 0 : index
    %178 = vector.load %arg3[%c45_221, %c0_222] : memref<76x256xf32, #tpu.memory_space<vmem>>, vector<3x188xf32>
    tpu.vector_store %arg3[%c45_221, %c0_222], %177 {strides = array<i32>} : memref<76x256xf32, #tpu.memory_space<vmem>>, vector<3x188xf32>,
    %c1_223 = arith.constant 1 : index
    %c0_224 = arith.constant 0 : index
    %c49_225 = arith.constant 49 : index
    %179 = vector.load %arg0[%c1_223, %c0_224, %c49_225] : memref<2x3x256xf32, #tpu.memory_space<vmem>>, vector<1x3x188xf32>
    %180 = vector.shape_cast %179 : vector<1x3x188xf32> to vector<3x188xf32>
    %c48_226 = arith.constant 48 : index
    %c0_227 = arith.constant 0 : index
    %181 = vector.load %arg3[%c48_226, %c0_227] : memref<76x256xf32, #tpu.memory_space<vmem>>, vector<3x188xf32>
    tpu.vector_store %arg3[%c48_226, %c0_227], %180 {strides = array<i32>} : memref<76x256xf32, #tpu.memory_space<vmem>>, vector<3x188xf32>,
    %c1_228 = arith.constant 1 : index
    %c0_229 = arith.constant 0 : index
    %c50_230 = arith.constant 50 : index
    %182 = vector.load %arg0[%c1_228, %c0_229, %c50_230] : memref<2x3x256xf32, #tpu.memory_space<vmem>>, vector<1x3x188xf32>
    %183 = vector.shape_cast %182 : vector<1x3x188xf32> to vector<3x188xf32>
    %c51_231 = arith.constant 51 : index
    %c0_232 = arith.constant 0 : index
    %184 = vector.load %arg3[%c51_231, %c0_232] : memref<76x256xf32, #tpu.memory_space<vmem>>, vector<3x188xf32>
    tpu.vector_store %arg3[%c51_231, %c0_232], %183 {strides = array<i32>} : memref<76x256xf32, #tpu.memory_space<vmem>>, vector<3x188xf32>,
    %c1_233 = arith.constant 1 : index
    %c0_234 = arith.constant 0 : index
    %c51_235 = arith.constant 51 : index
    %185 = vector.load %arg0[%c1_233, %c0_234, %c51_235] : memref<2x3x256xf32, #tpu.memory_space<vmem>>, vector<1x3x188xf32>
    %186 = vector.shape_cast %185 : vector<1x3x188xf32> to vector<3x188xf32>
    %c54_236 = arith.constant 54 : index
    %c0_237 = arith.constant 0 : index
    %187 = vector.load %arg3[%c54_236, %c0_237] : memref<76x256xf32, #tpu.memory_space<vmem>>, vector<3x188xf32>
    tpu.vector_store %arg3[%c54_236, %c0_237], %186 {strides = array<i32>} : memref<76x256xf32, #tpu.memory_space<vmem>>, vector<3x188xf32>,
    %c1_238 = arith.constant 1 : index
    %c0_239 = arith.constant 0 : index
    %c52_240 = arith.constant 52 : index
    %188 = vector.load %arg0[%c1_238, %c0_239, %c52_240] : memref<2x3x256xf32, #tpu.memory_space<vmem>>, vector<1x3x188xf32>
    %189 = vector.shape_cast %188 : vector<1x3x188xf32> to vector<3x188xf32>
    %c57_241 = arith.constant 57 : index
    %c0_242 = arith.constant 0 : index
    %190 = vector.load %arg3[%c57_241, %c0_242] : memref<76x256xf32, #tpu.memory_space<vmem>>, vector<3x188xf32>
    tpu.vector_store %arg3[%c57_241, %c0_242], %189 {strides = array<i32>} : memref<76x256xf32, #tpu.memory_space<vmem>>, vector<3x188xf32>,
    %c1_243 = arith.constant 1 : index
    %c0_244 = arith.constant 0 : index
    %c64_245 = arith.constant 64 : index
    %191 = vector.load %arg0[%c1_243, %c0_244, %c64_245] : memref<2x3x256xf32, #tpu.memory_space<vmem>>, vector<1x3x188xf32>
    %192 = vector.shape_cast %191 : vector<1x3x188xf32> to vector<3x188xf32>
    %c60_246 = arith.constant 60 : index
    %c0_247 = arith.constant 0 : index
    %193 = vector.load %arg3[%c60_246, %c0_247] : memref<76x256xf32, #tpu.memory_space<vmem>>, vector<3x188xf32>
    tpu.vector_store %arg3[%c60_246, %c0_247], %192 {strides = array<i32>} : memref<76x256xf32, #tpu.memory_space<vmem>>, vector<3x188xf32>,
    %c1_248 = arith.constant 1 : index
    %c0_249 = arith.constant 0 : index
    %c65_250 = arith.constant 65 : index
    %194 = vector.load %arg0[%c1_248, %c0_249, %c65_250] : memref<2x3x256xf32, #tpu.memory_space<vmem>>, vector<1x3x188xf32>
    %195 = vector.shape_cast %194 : vector<1x3x188xf32> to vector<3x188xf32>
    %c63_251 = arith.constant 63 : index
    %c0_252 = arith.constant 0 : index
    %196 = vector.load %arg3[%c63_251, %c0_252] : memref<76x256xf32, #tpu.memory_space<vmem>>, vector<3x188xf32>
    tpu.vector_store %arg3[%c63_251, %c0_252], %195 {strides = array<i32>} : memref<76x256xf32, #tpu.memory_space<vmem>>, vector<3x188xf32>,
    %c1_253 = arith.constant 1 : index
    %c0_254 = arith.constant 0 : index
    %c66_255 = arith.constant 66 : index
    %197 = vector.load %arg0[%c1_253, %c0_254, %c66_255] : memref<2x3x256xf32, #tpu.memory_space<vmem>>, vector<1x3x188xf32>
    %198 = vector.shape_cast %197 : vector<1x3x188xf32> to vector<3x188xf32>
    %c66_256 = arith.constant 66 : index
    %c0_257 = arith.constant 0 : index
    %199 = vector.load %arg3[%c66_256, %c0_257] : memref<76x256xf32, #tpu.memory_space<vmem>>, vector<3x188xf32>
    tpu.vector_store %arg3[%c66_256, %c0_257], %198 {strides = array<i32>} : memref<76x256xf32, #tpu.memory_space<vmem>>, vector<3x188xf32>,
    %c1_258 = arith.constant 1 : index
    %c0_259 = arith.constant 0 : index
    %c67_260 = arith.constant 67 : index
    %200 = vector.load %arg0[%c1_258, %c0_259, %c67_260] : memref<2x3x256xf32, #tpu.memory_space<vmem>>, vector<1x3x188xf32>
    %201 = vector.shape_cast %200 : vector<1x3x188xf32> to vector<3x188xf32>
    %c69_261 = arith.constant 69 : index
    %c0_262 = arith.constant 0 : index
    %202 = vector.load %arg3[%c69_261, %c0_262] : memref<76x256xf32, #tpu.memory_space<vmem>>, vector<3x188xf32>
    tpu.vector_store %arg3[%c69_261, %c0_262], %201 {strides = array<i32>} : memref<76x256xf32, #tpu.memory_space<vmem>>, vector<3x188xf32>,
    %c1_263 = arith.constant 1 : index
    %c0_264 = arith.constant 0 : index
    %c68_265 = arith.constant 68 : index
    %203 = vector.load %arg0[%c1_263, %c0_264, %c68_265] : memref<2x3x256xf32, #tpu.memory_space<vmem>>, vector<1x3x188xf32>
    %204 = vector.shape_cast %203 : vector<1x3x188xf32> to vector<3x188xf32>
    %c72_266 = arith.constant 72 : index
    %c0_267 = arith.constant 0 : index
    %205 = vector.load %arg3[%c72_266, %c0_267] : memref<76x256xf32, #tpu.memory_space<vmem>>, vector<3x188xf32>
    tpu.vector_store %arg3[%c72_266, %c0_267], %204 {strides = array<i32>} : memref<76x256xf32, #tpu.memory_space<vmem>>, vector<3x188xf32>,
    %c0_268 = arith.constant 0 : index
    %c0_269 = arith.constant 0 : index
    %206 = vector.load %arg1[%c0_268, %c0_269] : memref<6x76xf32, #tpu.memory_space<vmem>>, vector<6x76xf32>
    %c0_270 = arith.constant 0 : index
    %c0_271 = arith.constant 0 : index
    %207 = vector.load %arg3[%c0_270, %c0_271] : memref<76x256xf32, #tpu.memory_space<vmem>>, vector<76x256xf32>
    %cst_272 = arith.constant dense<0.000000e+00> : vector<6x256xf32>
    %208 = tpu.matmul %206, %207, %cst_272 {dimension_numbers = #tpu.dot_dimension_numbers<[1], [0], [0], [1], [0, 0, 1, 1], [], []>} : vector<6x76xf32>, vector<76x256xf32>, vector<6x256xf32> -> vector<6x256xf32>
    %c0_273 = arith.constant 0 : index
    %c0_274 = arith.constant 0 : index
    %209 = vector.load %arg4[%c0_273, %c0_274] : memref<6x256xf32, #tpu.memory_space<vmem>>, vector<6x256xf32>
    tpu.vector_store %arg4[%c0_273, %c0_274], %208 {strides = array<i32>} : memref<6x256xf32, #tpu.memory_space<vmem>>, vector<6x256xf32>,
    %c0_275 = arith.constant 0 : index
    %c0_276 = arith.constant 0 : index
    %210 = vector.load %arg4[%c0_275, %c0_276] : memref<6x256xf32, #tpu.memory_space<vmem>>, vector<6x12xf32>
    %c1_277 = arith.constant 1 : index
    %c0_278 = arith.constant 0 : index
    %c0_279 = arith.constant 0 : index
    %211 = vector.load %arg2[%c1_277, %c0_278, %c0_279] : memref<2x6x144xf32, #tpu.memory_space<vmem>>, vector<1x6x12xf32>
    %212 = vector.shape_cast %211 : vector<1x6x12xf32> to vector<6x12xf32>
    %213 = vector.shape_cast %210 : vector<6x12xf32> to vector<1x6x12xf32>
    tpu.vector_store %arg2[%c1_277, %c0_278, %c0_279], %213 {strides = array<i32>} : memref<2x6x144xf32, #tpu.memory_space<vmem>>, vector<1x6x12xf32>,
    %c0_280 = arith.constant 0 : index
    %c16_281 = arith.constant 16 : index
    %214 = vector.load %arg4[%c0_280, %c16_281] : memref<6x256xf32, #tpu.memory_space<vmem>>, vector<6x12xf32>
    %c1_282 = arith.constant 1 : index
    %c0_283 = arith.constant 0 : index
    %c12_284 = arith.constant 12 : index
    %215 = vector.load %arg2[%c1_282, %c0_283, %c12_284] : memref<2x6x144xf32, #tpu.memory_space<vmem>>, vector<1x6x12xf32>
    %216 = vector.shape_cast %215 : vector<1x6x12xf32> to vector<6x12xf32>
    %217 = vector.shape_cast %214 : vector<6x12xf32> to vector<1x6x12xf32>
    tpu.vector_store %arg2[%c1_282, %c0_283, %c12_284], %217 {strides = array<i32>} : memref<2x6x144xf32, #tpu.memory_space<vmem>>, vector<1x6x12xf32>,
    %c0_285 = arith.constant 0 : index
    %c32_286 = arith.constant 32 : index
    %218 = vector.load %arg4[%c0_285, %c32_286] : memref<6x256xf32, #tpu.memory_space<vmem>>, vector<6x12xf32>
    %c1_287 = arith.constant 1 : index
    %c0_288 = arith.constant 0 : index
    %c24_289 = arith.constant 24 : index
    %219 = vector.load %arg2[%c1_287, %c0_288, %c24_289] : memref<2x6x144xf32, #tpu.memory_space<vmem>>, vector<1x6x12xf32>
    %220 = vector.shape_cast %219 : vector<1x6x12xf32> to vector<6x12xf32>
    %221 = vector.shape_cast %218 : vector<6x12xf32> to vector<1x6x12xf32>
    tpu.vector_store %arg2[%c1_287, %c0_288, %c24_289], %221 {strides = array<i32>} : memref<2x6x144xf32, #tpu.memory_space<vmem>>, vector<1x6x12xf32>,
    %c0_290 = arith.constant 0 : index
    %c48_291 = arith.constant 48 : index
    %222 = vector.load %arg4[%c0_290, %c48_291] : memref<6x256xf32, #tpu.memory_space<vmem>>, vector<6x12xf32>
    %c1_292 = arith.constant 1 : index
    %c0_293 = arith.constant 0 : index
    %c36_294 = arith.constant 36 : index
    %223 = vector.load %arg2[%c1_292, %c0_293, %c36_294] : memref<2x6x144xf32, #tpu.memory_space<vmem>>, vector<1x6x12xf32>
    %224 = vector.shape_cast %223 : vector<1x6x12xf32> to vector<6x12xf32>
    %225 = vector.shape_cast %222 : vector<6x12xf32> to vector<1x6x12xf32>
    tpu.vector_store %arg2[%c1_292, %c0_293, %c36_294], %225 {strides = array<i32>} : memref<2x6x144xf32, #tpu.memory_space<vmem>>, vector<1x6x12xf32>,
    %c0_295 = arith.constant 0 : index
    %c64_296 = arith.constant 64 : index
    %226 = vector.load %arg4[%c0_295, %c64_296] : memref<6x256xf32, #tpu.memory_space<vmem>>, vector<6x12xf32>
    %c1_297 = arith.constant 1 : index
    %c0_298 = arith.constant 0 : index
    %c48_299 = arith.constant 48 : index
    %227 = vector.load %arg2[%c1_297, %c0_298, %c48_299] : memref<2x6x144xf32, #tpu.memory_space<vmem>>, vector<1x6x12xf32>
    %228 = vector.shape_cast %227 : vector<1x6x12xf32> to vector<6x12xf32>
    %229 = vector.shape_cast %226 : vector<6x12xf32> to vector<1x6x12xf32>
    tpu.vector_store %arg2[%c1_297, %c0_298, %c48_299], %229 {strides = array<i32>} : memref<2x6x144xf32, #tpu.memory_space<vmem>>, vector<1x6x12xf32>,
    %c0_300 = arith.constant 0 : index
    %c80_301 = arith.constant 80 : index
    %230 = vector.load %arg4[%c0_300, %c80_301] : memref<6x256xf32, #tpu.memory_space<vmem>>, vector<6x12xf32>
    %c1_302 = arith.constant 1 : index
    %c0_303 = arith.constant 0 : index
    %c60_304 = arith.constant 60 : index
    %231 = vector.load %arg2[%c1_302, %c0_303, %c60_304] : memref<2x6x144xf32, #tpu.memory_space<vmem>>, vector<1x6x12xf32>
    %232 = vector.shape_cast %231 : vector<1x6x12xf32> to vector<6x12xf32>
    %233 = vector.shape_cast %230 : vector<6x12xf32> to vector<1x6x12xf32>
    tpu.vector_store %arg2[%c1_302, %c0_303, %c60_304], %233 {strides = array<i32>} : memref<2x6x144xf32, #tpu.memory_space<vmem>>, vector<1x6x12xf32>,
    %c0_305 = arith.constant 0 : index
    %c96_306 = arith.constant 96 : index
    %234 = vector.load %arg4[%c0_305, %c96_306] : memref<6x256xf32, #tpu.memory_space<vmem>>, vector<6x12xf32>
    %c1_307 = arith.constant 1 : index
    %c0_308 = arith.constant 0 : index
    %c72_309 = arith.constant 72 : index
    %235 = vector.load %arg2[%c1_307, %c0_308, %c72_309] : memref<2x6x144xf32, #tpu.memory_space<vmem>>, vector<1x6x12xf32>
    %236 = vector.shape_cast %235 : vector<1x6x12xf32> to vector<6x12xf32>
    %237 = vector.shape_cast %234 : vector<6x12xf32> to vector<1x6x12xf32>
    tpu.vector_store %arg2[%c1_307, %c0_308, %c72_309], %237 {strides = array<i32>} : memref<2x6x144xf32, #tpu.memory_space<vmem>>, vector<1x6x12xf32>,
    %c0_310 = arith.constant 0 : index
    %c112_311 = arith.constant 112 : index
    %238 = vector.load %arg4[%c0_310, %c112_311] : memref<6x256xf32, #tpu.memory_space<vmem>>, vector<6x12xf32>
    %c1_312 = arith.constant 1 : index
    %c0_313 = arith.constant 0 : index
    %c84_314 = arith.constant 84 : index
    %239 = vector.load %arg2[%c1_312, %c0_313, %c84_314] : memref<2x6x144xf32, #tpu.memory_space<vmem>>, vector<1x6x12xf32>
    %240 = vector.shape_cast %239 : vector<1x6x12xf32> to vector<6x12xf32>
    %241 = vector.shape_cast %238 : vector<6x12xf32> to vector<1x6x12xf32>
    tpu.vector_store %arg2[%c1_312, %c0_313, %c84_314], %241 {strides = array<i32>} : memref<2x6x144xf32, #tpu.memory_space<vmem>>, vector<1x6x12xf32>,
    %c0_315 = arith.constant 0 : index
    %c128_316 = arith.constant 128 : index
    %242 = vector.load %arg4[%c0_315, %c128_316] : memref<6x256xf32, #tpu.memory_space<vmem>>, vector<6x12xf32>
    %c1_317 = arith.constant 1 : index
    %c0_318 = arith.constant 0 : index
    %c96_319 = arith.constant 96 : index
    %243 = vector.load %arg2[%c1_317, %c0_318, %c96_319] : memref<2x6x144xf32, #tpu.memory_space<vmem>>, vector<1x6x12xf32>
    %244 = vector.shape_cast %243 : vector<1x6x12xf32> to vector<6x12xf32>
    %245 = vector.shape_cast %242 : vector<6x12xf32> to vector<1x6x12xf32>
    tpu.vector_store %arg2[%c1_317, %c0_318, %c96_319], %245 {strides = array<i32>} : memref<2x6x144xf32, #tpu.memory_space<vmem>>, vector<1x6x12xf32>,
    %c0_320 = arith.constant 0 : index
    %c144_321 = arith.constant 144 : index
    %246 = vector.load %arg4[%c0_320, %c144_321] : memref<6x256xf32, #tpu.memory_space<vmem>>, vector<6x12xf32>
    %c1_322 = arith.constant 1 : index
    %c0_323 = arith.constant 0 : index
    %c108_324 = arith.constant 108 : index
    %247 = vector.load %arg2[%c1_322, %c0_323, %c108_324] : memref<2x6x144xf32, #tpu.memory_space<vmem>>, vector<1x6x12xf32>
    %248 = vector.shape_cast %247 : vector<1x6x12xf32> to vector<6x12xf32>
    %249 = vector.shape_cast %246 : vector<6x12xf32> to vector<1x6x12xf32>
    tpu.vector_store %arg2[%c1_322, %c0_323, %c108_324], %249 {strides = array<i32>} : memref<2x6x144xf32, #tpu.memory_space<vmem>>, vector<1x6x12xf32>,
    %c0_325 = arith.constant 0 : index
    %c160_326 = arith.constant 160 : index
    %250 = vector.load %arg4[%c0_325, %c160_326] : memref<6x256xf32, #tpu.memory_space<vmem>>, vector<6x12xf32>
    %c1_327 = arith.constant 1 : index
    %c0_328 = arith.constant 0 : index
    %c120_329 = arith.constant 120 : index
    %251 = vector.load %arg2[%c1_327, %c0_328, %c120_329] : memref<2x6x144xf32, #tpu.memory_space<vmem>>, vector<1x6x12xf32>
    %252 = vector.shape_cast %251 : vector<1x6x12xf32> to vector<6x12xf32>
    %253 = vector.shape_cast %250 : vector<6x12xf32> to vector<1x6x12xf32>
    tpu.vector_store %arg2[%c1_327, %c0_328, %c120_329], %253 {strides = array<i32>} : memref<2x6x144xf32, #tpu.memory_space<vmem>>, vector<1x6x12xf32>,
    %c0_330 = arith.constant 0 : index
    %c176_331 = arith.constant 176 : index
    %254 = vector.load %arg4[%c0_330, %c176_331] : memref<6x256xf32, #tpu.memory_space<vmem>>, vector<6x12xf32>
    %c1_332 = arith.constant 1 : index
    %c0_333 = arith.constant 0 : index
    %c132_334 = arith.constant 132 : index
    %255 = vector.load %arg2[%c1_332, %c0_333, %c132_334] : memref<2x6x144xf32, #tpu.memory_space<vmem>>, vector<1x6x12xf32>
    %256 = vector.shape_cast %255 : vector<1x6x12xf32> to vector<6x12xf32>
    %257 = vector.shape_cast %254 : vector<6x12xf32> to vector<1x6x12xf32>
    tpu.vector_store %arg2[%c1_332, %c0_333, %c132_334], %257 {strides = array<i32>} : memref<2x6x144xf32, #tpu.memory_space<vmem>>, vector<1x6x12xf32>,
    return
  }
}

</mosaic_0001>

<bundles_post_ra>
// kernel: torch_conv_bn_forward.1
= control target key start
LH: loop header
LB: loop body
LE: loop exit
PB: predicated region body
PF: predicated region fallthrough
CT: control target
= control target key end

     0   :  { %v1246_v3 = vmov 0.0   ;;  %s1247_s15 = smov 60   ;;  %s1248_s16 = smov 63   ;;  %v31_v9 = vlaneseq  ;;  %v1249_v15 = vmov 1.0   ;;  %vm43_vm1 = vcmask 485376   ;;  %s1783_s0 = inlined_call_operand.vmem [shape: f32[2,3,256], index: 0, kind: input, shape index: {}]   ;;  %s1784_s1 = inlined_call_operand.vmem [shape: f32[6,76], index: 1, kind: input, shape index: {}]   ;;  %s1785_s2 = inlined_call_operand.vmem [shape: f32[2,6,144], index: 2, kind: output, shape index: {}]  }
   0x1   :  { %v401_v0 = vld [vmem:[%s1783_s0] sm:$0x77]  ;;  %29 = vst [vmem:[#allocation2 + $0x90] sm:$0xf] %v1246_v3  ;;  %30 = vst [vmem:[#allocation2 + $0x98] sm:$0xf] %v1246_v3  ;;  %509 = vmatprep.mubr.f32.mxu0 %v1246_v3  ;;  %1037 = vmatprep.mubr.f32.mxu1 %v1246_v3 }
   0x2   :  { %v354_v1 = vld [vmem:[%s1783_s0] sm:$0x77]  ;;  %11 = vst [vmem:[#allocation2] sm:$0xff] %v1246_v3  ;;  %12 = vst [vmem:[#allocation2 + $0x8] sm:$0xff] %v1246_v3  ;;  %404 = vrot.lane.b32.xlu0 %v401_v0, %s1247_s15  ;;  %v403_v4 = vcombine.high %v401_v0, %v401_v0  ;;  %vm33_vm0 = vcmp.lt.s32.totalorder %v31_v9, 256  ;;  %s1250_s21 = smov 62  }
   0x3   :  { %v371_v2 = vld [vmem:[%s1783_s0] sm:$0x77]  ;;  %13 = vst [vmem:[#allocation2 + $0x10] sm:$0xff] %v1246_v3  ;;  %14 = vst [vmem:[#allocation2 + $0x18] sm:$0xff] %v1246_v3  ;;  %v357_v5 = vrot.slane %v354_v1, 1  ;;  %v356_v6 = vcombine.high %v354_v1, %v354_v1  ;;  %s1251_s24 = smov 61  }
   0x4   :  { %15 = vst [vmem:[#allocation2 + $0x20] sm:$0xff] %v1246_v3  ;;  %16 = vst [vmem:[#allocation2 + $0x28] sm:$0xff] %v1246_v3  ;;  %v373_v8 = vcombine.high %v371_v2, %v371_v2  ;;  %v386_v10 = vld [vmem:[%s1783_s0] sm:$0x77]  ;;  %v374_v11 = vrot.slane %v371_v2, 6  ;;  %s1252_s25 = smov 77  }
   0x5   :  { %17 = vst [vmem:[#allocation2 + $0x30] sm:$0xff] %v1246_v3  ;;  %18 = vst [vmem:[#allocation2 + $0x38] sm:$0xff] %v1246_v3  ;;  %359 = vrot.lane.b32.xlu1 %v357_v5, %s1248_s16  ;;  %v358_v7 = vrot.slane %v356_v6, 1  ;;  %v388_v13 = vcombine.high %v386_v10, %v386_v10  ;;  %v309_v14 = vld [vmem:[%s1783_s0] sm:$0x77]  ;;  %v389_v16 = vrot.slane %v386_v10, 3 }
   0x6   :  { %19 = vst [vmem:[#allocation2 + $0x40] sm:$0xff] %v1246_v3  ;;  %20 = vst [vmem:[#allocation2 + $0x48] sm:$0xff] %v1246_v3  ;;  %406 = vrot.lane.b32.xlu0 %v403_v4, %s1247_s15  ;;  %v375_v12 = vrot.slane %v373_v8, 6  ;;  %v311_v18 = vcombine.high %v309_v14, %v309_v14  ;;  %v326_v19 = vld [vmem:[%s1783_s0] sm:$0x77]  ;;  %v312_v20 = vrot.slane %v309_v14, 2 }
   0x7   :  { %21 = vst [vmem:[#allocation2 + $0x50] sm:$0xff] %v1246_v3  ;;  %22 = vst [vmem:[#allocation2 + $0x58] sm:$0xff] %v1246_v3  ;;  %v390_v17 = vrot.slane %v388_v13, 3  ;;  %v328_v22 = vcombine.high %v326_v19, %v326_v19  ;;  %v329_v23 = vrot.slane %v326_v19, 7  ;;  %v341_v24 = vld [vmem:[%s1783_s0] sm:$0x77] }
   0x8   :  { %23 = vst [vmem:[#allocation2 + $0x60] sm:$0xff] %v1246_v3  ;;  %24 = vst [vmem:[#allocation2 + $0x68] sm:$0xff] %v1246_v3  ;;  %v313_v21 = vrot.slane %v311_v18, 2  ;;  %s1253_s28 = smov 76   ;;  %v343_v26 = vcombine.low %v341_v24, %v341_v24  ;;  %v281_v27 = vld [vmem:[%s1783_s0] sm:$0x77] }
   0x9   :  { %25 = vst [vmem:[#allocation2 + $0x70] sm:$0xff] %v1246_v3  ;;  %26 = vst [vmem:[#allocation2 + $0x78] sm:$0xff] %v1246_v3  ;;  %361 = vrot.lane.b32.xlu1 %v358_v7, %s1248_s16  ;;  %v330_v25 = vrot.slane %v328_v22, 7  ;;  %v294_v28 = vld [vmem:[%s1783_s0] sm:$0x77]  ;;  %s1254_s5 = smov 64   ;;  %v283_v29 = vcombine.high %v281_v27, %v281_v27 }
   0xa   :  { %27 = vst [vmem:[#allocation2 + $0x80] sm:$0xff] %v1246_v3  ;;  %28 = vst [vmem:[#allocation2 + $0x88] sm:$0xff] %v1246_v3  ;;  %376 = vrot.lane.b32.xlu0 %v374_v11, %s1250_s21  ;;  %v296_v30 = vcombine.high %v294_v28, %v294_v28  ;;  %v234_v31 = vld [vmem:[%s1783_s0] sm:$0x77]  ;;  %s1255_s8 = smov 79   ;;  %v297_v32 = vrot.slane %v294_v28, 5 }
   0xb   :  { %36 = vst.msk [vmem:[#allocation2 + $0x93] ss:$8 sm:$0x3] %vm33_vm0, %v1249_v15  ;;  %v236_v34 = vcombine.high %v234_v31, %v234_v31  ;;  %v251_v35 = vld [vmem:[%s1783_s0] sm:$0x77]  ;;  %s1256_s11 = smov 78  }
   0xc   :  { %v298_v33 = vrot.slane %v296_v30, 5  ;;  %v237_v36 = vrot.slane %v234_v31, 1  ;;  %v253_v38 = vcombine.high %v251_v35, %v251_v35  ;;  %v266_v39 = vld [vmem:[%s1783_s0] sm:$0x77]  ;;  %s1257_s14 = smov 93   ;;  %v254_v40 = vrot.slane %v251_v35, 6 }
   0xd   :  { %378 = vrot.lane.b32.xlu1 %v375_v12, %s1250_s21  ;;  %v238_v37 = vrot.slane %v236_v34, 1  ;;  %v268_v42 = vcombine.high %v266_v39, %v266_v39  ;;  %s1258_s17 = smov 92   ;;  %v269_v43 = vrot.slane %v266_v39, 3  ;;  %v1147_v45 = vld [vmem:[%s1783_s0 + $0x8] sm:$0x77]  ;;  %s1259_s23 = smov 80  }
   0xe   :  { %391 = vrot.lane.b32.xlu0 %v389_v16, %s1251_s24  ;;  %v255_v41 = vrot.slane %v253_v38, 6  ;;  %v189_v46 = vld [vmem:[%s1783_s0] sm:$0x77]  ;;  %v933_v47 = vcombine.high %v1147_v45, %v1147_v45  ;;  %s1260_s29 = smov 96   ;;  %v1144_v56 = vld [vmem:[%s1783_s0 + $0x8] sm:$0x77] }
   0xf   :  { %v270_v44 = vrot.slane %v268_v42, 3  ;;  %v191_v48 = vcombine.high %v189_v46, %v189_v46  ;;  %v206_v49 = vld [vmem:[%s1783_s0] sm:$0x77]  ;;  %v192_v50 = vrot.slane %v189_v46, 2  ;;  %s1261_s7 = smov 95   ;;  %v889_v58 = vcombine.high %v1144_v56, %v1144_v56  ;;  %s1262_s10 = smov 94  }
  0x10   :  { %v208_v52 = vcombine.high %v206_v49, %v206_v49  ;;  %v209_v53 = vrot.slane %v206_v49, 7  ;;  %v221_v54 = vld [vmem:[%s1783_s0] sm:$0x77]  ;;  %v1145_v59 = vld [vmem:[%s1783_s0 + $0x8] sm:$0x77]  ;;  %v890_v60 = vrot.slane %v1144_v56, 1 }
  0x11   :  { %393 = vrot.lane.b32.xlu1 %v390_v17, %s1251_s24  ;;  %v193_v51 = vrot.slane %v191_v48, 2  ;;  %v223_v57 = vcombine.low %v221_v54, %v221_v54  ;;  %v891_v61 = vrot.slane %v889_v58, 1  ;;  %v905_v62 = vcombine.high %v1145_v59, %v1145_v59  ;;  %v1146_v63 = vld [vmem:[%s1783_s0 + $0x8] sm:$0x77]  ;;  %v161_v5 = vld [vmem:[%s1783_s0] sm:$0x77] }
  0x12   :  { %314 = vrot.lane.b32.xlu0 %v312_v20, %s1252_s25  ;;  %v210_v55 = vrot.slane %v208_v52, 7  ;;  %v906_v0 = vrot.slane %v1145_v59, 6  ;;  %v919_v2 = vcombine.high %v1146_v63, %v1146_v63  ;;  %v920_v3 = vrot.slane %v1146_v63, 3  ;;  %v174_v6 = vld [vmem:[%s1783_s0] sm:$0x77]  ;;  %s1264_s3 = smov 108  }
  0x13   :  { %v907_v1 = vrot.slane %v905_v62, 6  ;;  %v163_v7 = vcombine.high %v161_v5, %v161_v5  ;;  %v176_v8 = vcombine.high %v174_v6, %v174_v6  ;;  %v1141_v9 = vld [vmem:[%s1783_s0 + $0x8] sm:$0x77]  ;;  %v177_v10 = vrot.slane %v174_v6, 5  ;;  %v110_v20 = vld [vmem:[%s1783_s0] sm:$0x77] }
  0x14   :  { %v921_v4 = vrot.slane %v919_v2, 3  ;;  %v847_v12 = vcombine.high %v1141_v9, %v1141_v9  ;;  %v1142_v13 = vld [vmem:[%s1783_s0 + $0x8] sm:$0x77]  ;;  %v848_v14 = vrot.slane %v1141_v9, 2  ;;  %v112_v22 = vcombine.high %v110_v20, %v110_v20  ;;  %s1265_s18 = smov 112   ;;  %s1270_s19 = smov 124  }
  0x15   :  { %316 = vrot.lane.b32.xlu1 %v313_v21, %s1252_s25  ;;  %v178_v11 = vrot.slane %v176_v8, 5  ;;  %v863_v16 = vcombine.high %v1142_v13, %v1142_v13  ;;  %v864_v17 = vrot.slane %v1142_v13, 7  ;;  %v1143_v18 = vld [vmem:[%s1783_s0 + $0x8] sm:$0x77]  ;;  %v38_v35 = vld [vmem:[%s1783_s0] sm:$0x77] }
  0x16   :  { %331 = vrot.lane.b32.xlu0 %v329_v23, %s1253_s28  ;;  %v849_v15 = vrot.slane %v847_v12, 2  ;;  %v877_v21 = vcombine.low %v1143_v18, %v1143_v18  ;;  %v129_v23 = vld [vmem:[%s1783_s0] sm:$0x77]  ;;  %v1140_v34 = vld [vmem:[%s1783_s0 + $0x8] sm:$0x77]  ;;  %vm408_vm2 = vcmask 490496  }
  0x17   :  { %v865_v19 = vrot.slane %v863_v16, 7  ;;  %v132_v28 = vrot.slane %v129_v23, 6  ;;  %42 = vst [vmem:[#allocation2] sm:$0x7] %v38_v35  ;;  %v833_v38 = vcombine.high %v1140_v34, %v1140_v34  ;;  %v61_v39 = vld [vmem:[%s1783_s0] sm:$0x77] }
  0x18   :  { %v63_v42 = vcombine.high %v61_v39, %v61_v39  ;;  %vm124_vm3 = vcmask 490503   ;;  %vm127_vm4 = vcmask 484352   ;;  %vm363_vm5 = vcmask 515072   ;;  %v45_v12 = vld [vmem:[%s1783_s0] sm:$0x77]  ;;  %s1271_s6 = smov 127  }
  0x19   :  { %333 = vrot.lane.b32.xlu1 %v330_v25, %s1253_s28  ;;  %v114_v25 = vrot.slane %v112_v22, 1  ;;  %vm143_vm6 = vcmask 487426   ;;  %vm380_vm7 = vcmask 506880   ;;  %vm438_vm8 = vcmask 1043456   ;;  %s1273_s12 = smov 120   ;;  %s1274_s13 = smov 116  }
  0x1a   :  { %344 = vrot.lane.b32.xlu0 %v343_v26, %s1254_s5  ;;  %v131_v26 = vcombine.high %v129_v23, %v129_v23  ;;  %v65_v46 = vrot.slane %v63_v42, 2  ;;  %vm159_vm9 = vcmask 490501   ;;  %vm1789_vm10 = vcmask 498688  }
  0x1b   :  { %vm75_vm11 = vcmask 490502   ;;  %vm78_vm12 = vcmask 483328   ;;  %vm1786_vm13 = vcmask 629760   ;;  %vm94_vm14 = vcmask 486401  }
  0x1c   :  { %vm1787_vm15 = vcmask 621568   ;;  %v48_v22 = vrot.slane %v45_v12, 5  ;;  %vm108_vm0 = vcmask 489476  }
  0x1d   :  { %346 = vrot.lane.b32.xlu1 %v341_v24, %s1254_s5  ;;  %v113_v24 = vrot.slane %v110_v20, 1 }
  0x1e   :  { %284 = vrot.lane.b32.xlu0 %v281_v27, %s1255_s8  ;;  %v145_v27 = vld [vmem:[%s1783_s0] sm:$0x77] }
  0x1f   :  { %v147_v30 = vcombine.high %v145_v27, %v145_v27  ;;  %v148_v31 = vrot.slane %v145_v27, 3 }
  0x21   :  { %286 = vrot.lane.b32.xlu1 %v283_v29, %s1255_s8  ;;  %v133_v29 = vrot.slane %v131_v26, 6 }
  0x22   :  { %299 = vrot.lane.b32.xlu0 %v297_v32, %s1256_s11  ;;  %v149_v32 = vrot.slane %v147_v30, 3 }
  0x25   :  { %301 = vrot.lane.b32.xlu1 %v298_v33, %s1256_s11  ;;  %v1139_v33 = vld [vmem:[%s1783_s0 + $0x8] sm:$0x77] }
  0x26   :  { %239 = vrot.lane.b32.xlu0 %v237_v36, %s1257_s14  ;;  %v40_v36 = vcombine.high %v38_v35, %v38_v35 }
  0x28   :  { %44 = vst.msk [vmem:[#allocation2 + $0x8] sm:$0x7] %vm43_vm1, %v40_v36 }
  0x29   :  { %241 = vrot.lane.b32.xlu1 %v238_v37, %s1257_s14  ;;  %v821_v37 = vcombine.high %v1139_v33, %v1139_v33 }
  0x2a   :  { %256 = vrot.lane.b32.xlu0 %v254_v40, %s1258_s17  ;;  %v834_v40 = vrot.slane %v1140_v34, 5 }
  0x2d   :  { %258 = vrot.lane.b32.xlu1 %v255_v41, %s1258_s17  ;;  %v835_v41 = vrot.slane %v833_v38, 5  ;;  %v1135_v38 = vld [vmem:[%s1783_s0 + $0x8] sm:$0x77] }
  0x2e   :  { %271 = vrot.lane.b32.xlu0 %v269_v43, %s1259_s23  ;;  %v80_v43 = vld [vmem:[%s1783_s0] sm:$0x77] }
  0x2f   :  { %v83_v49 = vrot.slane %v80_v43, 7 }
  0x31   :  { %273 = vrot.lane.b32.xlu1 %v270_v44, %s1259_s23  ;;  %v64_v44 = vrot.slane %v61_v39, 2 }
  0x32   :  { %934 = vrot.lane.b32.xlu0 %v1147_v45, %s1247_s15 }
  0x35   :  { %936 = vrot.lane.b32.xlu1 %v933_v47, %s1247_s15  ;;  %v82_v47 = vcombine.high %v80_v43, %v80_v43  ;;  %s1268_s15 = smov 126   ;;  %v765_v43 = vcombine.low %v1135_v38, %v1135_v38 }
  0x36   :  { %194 = vrot.lane.b32.xlu0 %v192_v50, %s1260_s29  ;;  %v96_v50 = vld [vmem:[%s1783_s0] sm:$0x77] }
  0x37   :  { %v84_v52 = vrot.slane %v82_v47, 7  ;;  %v98_v56 = vcombine.low %v96_v50, %v96_v50  ;;  %v1131_v47 = vld [vmem:[%s1783_s0 + $0x8] sm:$0x77] }
  0x39   :  { %196 = vrot.lane.b32.xlu1 %v193_v51, %s1260_s29 }
  0x3a   :  { %211 = vrot.lane.b32.xlu0 %v209_v53, %s1261_s7 }
  0x3d   :  { %213 = vrot.lane.b32.xlu1 %v210_v55, %s1261_s7 }
  0x3e   :  { %224 = vrot.lane.b32.xlu0 %v223_v57, %s1262_s10 }
  0x41   :  { %226 = vrot.lane.b32.xlu1 %v221_v54, %s1262_s10  ;;  %v1136_v54 = vld [vmem:[%s1783_s0 + $0x8] sm:$0x77] }
  0x42   :  { %892 = vrot.lane.b32.xlu0 %v890_v60, %s1248_s16  ;;  %v777_v59 = vcombine.high %v1136_v54, %v1136_v54  ;;  %v1137_v60 = vld [vmem:[%s1783_s0 + $0x8] sm:$0x77]  ;;  %v778_v62 = vrot.slane %v1136_v54, 1 }
  0x43   :  { %v1128_v54 = vld [vmem:[%s1783_s0 + $0x8] sm:$0x77] }
  0x44   :  { %v779_v2 = vrot.slane %v777_v59, 1 }
  0x45   :  { %894 = vrot.lane.b32.xlu1 %v891_v61, %s1248_s16  ;;  %s1267_s16 = smov 110  }
  0x46   :  { %908 = vrot.lane.b32.xlu0 %v906_v0, %s1250_s21 }
  0x49   :  { %910 = vrot.lane.b32.xlu1 %v907_v1, %s1250_s21  ;;  %s1263_s21 = smov 109  }
  0x4a   :  { %922 = vrot.lane.b32.xlu0 %v920_v3, %s1251_s24  ;;  %v793_v3 = vcombine.high %v1137_v60, %v1137_v60 }
  0x4d   :  { %924 = vrot.lane.b32.xlu1 %v921_v4, %s1251_s24 }
  0x4e   :  { %164 = vrot.lane.b32.xlu0 %v161_v5, %s1263_s21  ;;  %v1138_v5 = vld [vmem:[%s1783_s0 + $0x8] sm:$0x77] }
  0x51   :  { %166 = vrot.lane.b32.xlu1 %v163_v7, %s1263_s21  ;;  %v794_v7 = vrot.slane %v1137_v60, 6 }
  0x52   :  { %179 = vrot.lane.b32.xlu0 %v177_v10, %s1264_s3  ;;  %v795_v10 = vrot.slane %v793_v3, 6 }
  0x55   :  { %181 = vrot.lane.b32.xlu1 %v178_v11, %s1264_s3  ;;  %v807_v11 = vcombine.high %v1138_v5, %v1138_v5 }
  0x56   :  { %850 = vrot.lane.b32.xlu0 %v848_v14, %s1252_s25  ;;  %v808_v14 = vrot.slane %v1138_v5, 3 }
  0x59   :  { %852 = vrot.lane.b32.xlu1 %v849_v15, %s1252_s25  ;;  %s1269_s25 = smov 125  }
  0x5a   :  { %866 = vrot.lane.b32.xlu0 %v864_v17, %s1253_s28  ;;  %v809_v17 = vrot.slane %v807_v11, 3 }
  0x5d   :  { %868 = vrot.lane.b32.xlu1 %v865_v19, %s1253_s28  ;;  %s1266_s28 = smov 111   ;;  %v1133_v19 = vld [vmem:[%s1783_s0 + $0x8] sm:$0x77] }
  0x5e   :  { %878 = vrot.lane.b32.xlu0 %v877_v21, %s1254_s5  ;;  %v735_v27 = vcombine.high %v1133_v19, %v1133_v19  ;;  %v736_v30 = vrot.slane %v1133_v19, 2 }
  0x61   :  { %880 = vrot.lane.b32.xlu1 %v1143_v18, %s1254_s5  ;;  %v47_v18 = vcombine.high %v45_v12, %v45_v12  ;;  %s1276_s5 = smov 100  }
  0x62   :  { %115 = vrot.lane.b32.xlu0 %v113_v24, %s1265_s18 }
  0x63   :  { %v49_v26 = vrot.slane %v47_v18, 5 }
  0x65   :  { %117 = vrot.lane.b32.xlu1 %v114_v25, %s1265_s18 }
  0x66   :  { %134 = vrot.lane.b32.xlu0 %v132_v28, %s1266_s28  ;;  %v1134_v28 = vld [vmem:[%s1783_s0 + $0x8] sm:$0x77] }
  0x67   :  { %v751_v34 = vcombine.high %v1134_v28, %v1134_v28  ;;  %v752_v36 = vrot.slane %v1134_v28, 7 }
  0x69   :  { %136 = vrot.lane.b32.xlu1 %v133_v29, %s1266_s28 }
  0x6a   :  { %150 = vrot.lane.b32.xlu0 %v148_v31, %s1267_s16 }
  0x6d   :  { %152 = vrot.lane.b32.xlu1 %v149_v32, %s1267_s16 }
  0x6e   :  { %822 = vrot.lane.b32.xlu0 %v1139_v33, %s1255_s8  ;;  %v737_v33 = vrot.slane %v735_v27, 2 }
  0x71   :  { %824 = vrot.lane.b32.xlu1 %v821_v37, %s1255_s8 }
  0x72   :  { %836 = vrot.lane.b32.xlu0 %v834_v40, %s1256_s11  ;;  %v753_v40 = vrot.slane %v751_v34, 7  ;;  %v1127_v34 = vld [vmem:[%s1783_s0 + $0x8] sm:$0x77] }
  0x74   :  { %v405_v45 = vpop.permute.xlu0 %404 }
  0x75   :  { %838 = vrot.lane.b32.xlu1 %v835_v41, %s1256_s11 }
  0x76   :  { %66 = vrot.lane.b32.xlu0 %v64_v44, %s1268_s15 }
  0x77   :  { %v360_v48 = vpop.permute.xlu1 %359 }
  0x78   :  { %v407_v51 = vpop.permute.xlu0 %406 }
  0x79   :  { %68 = vrot.lane.b32.xlu1 %v65_v46, %s1268_s15  ;;  %v409_v53 = vsel %vm408_vm2, %v405_v45, %v407_v51  ;;  %413 = vst.msk [vmem:[#allocation2 + $0x98] sm:$0x7] %vm43_vm1, %v407_v51 }
  0x7a   :  { %412 = vst [vmem:[#allocation2 + $0x90] sm:$0x7] %v409_v53  ;;  %85 = vrot.lane.b32.xlu0 %v83_v49, %s1269_s25 }
  0x7b   :  { %v362_v55 = vpop.permute.xlu1 %361 }
  0x7c   :  { %v364_v57 = vsel %vm363_vm5, %v360_v48, %v362_v55  ;;  %368 = vst.msk [vmem:[#allocation2 + $0x78] sm:$0x80] %vm124_vm3, %v362_v55  ;;  %v377_v58 = vpop.permute.xlu0 %376  ;;  %v1132_v48 = vld [vmem:[%s1783_s0 + $0x8] sm:$0x77] }
  0x7d   :  { %370 = vst.msk [vmem:[#allocation2 + $0x88] sm:$0x3] %vm127_vm4, %v362_v55  ;;  %367 = vst [vmem:[#allocation2 + $0x80] ss:$-12 sps:$4 sm:$0x83] %v364_v57   ;;  %87 = vrot.lane.b32.xlu1 %v84_v52, %s1269_s25  ;;  %v709_v52 = vcombine.high %v1131_v47, %v1131_v47  ;;  %v721_v53 = vcombine.high %v1132_v48, %v1132_v48  ;;  %v722_v57 = vrot.slane %v1132_v48, 5 }
  0x7e   :  { %99 = vrot.lane.b32.xlu0 %v98_v56, %s1270_s19 }
  0x7f   :  { %v379_v61 = vpop.permute.xlu1 %378 }
  0x80   :  { %v381_v63 = vsel %vm380_vm7, %v377_v58, %v379_v61  ;;  %385 = vst.msk [vmem:[#allocation2 + $0x88] sm:$0x1c] %vm143_vm6, %v379_v61  ;;  %v434_v0 = vld [vmem:[#allocation2 + $0x98] sm:$0xf]  ;;  %v392_v1 = vpop.permute.xlu0 %391  ;;  %v723_v61 = vrot.slane %v721_v53, 5 }
  0x81   :  { %384 = vst [vmem:[#allocation2 + $0x80] sm:$0x1c] %v381_v63  ;;  %101 = vrot.lane.b32.xlu1 %v96_v50, %s1270_s19  ;;  %1120 = vmatprep.subr.msk.mxu0 %vm438_vm8, %v434_v0  ;;  %v433_v4 = vld [vmem:[#allocation2 + $0x90] sm:$0xf]  ;;  %v1129_v63 = vld [vmem:[%s1783_s0 + $0x8] sm:$0x77] }
  0x82   :  { %1121 = vmatpush1.msk.msra.mxu0 %vm438_vm8, %v433_v4  ;;  %780 = vrot.lane.b32.xlu0 %v778_v62, %s1257_s14  ;;  %v665_v62 = vcombine.high %v1128_v54, %v1128_v54  ;;  %v681_v5 = vcombine.high %v1129_v63, %v1129_v63 }
  0x83   :  { %v394_v6 = vpop.permute.xlu1 %393 }
  0x84   :  { %v396_v8 = vsel %vm1789_vm10, %v392_v1, %v394_v6  ;;  %400 = vst.msk [vmem:[#allocation2 + $0x88] sm:$0xe0] %vm159_vm9, %v394_v6  ;;  %v315_v9 = vpop.permute.xlu0 %314  ;;  %vm1791_vm10 = vcmask 637952   ;;  %v666_v1 = vrot.slane %v1128_v54, 1  ;;  %v667_v4 = vrot.slane %v665_v62, 1 }
  0x85   :  { %399 = vst [vmem:[#allocation2 + $0x80] sm:$0xe0] %v396_v8  ;;  %782 = vrot.lane.b32.xlu1 %v779_v2, %s1257_s14  ;;  %v1130_v6 = vld [vmem:[%s1783_s0 + $0x8] sm:$0x77]  ;;  %v682_v8 = vrot.slane %v1129_v63, 6  ;;  %v683_v11 = vrot.slane %v681_v5, 6 }
  0x86   :  { %796 = vrot.lane.b32.xlu0 %v794_v7, %s1258_s17  ;;  %v695_v12 = vcombine.high %v1130_v6, %v1130_v6 }
  0x87   :  { %v317_v13 = vpop.permute.xlu1 %316 }
  0x88   :  { %v319_v15 = vsel %vm1786_vm13, %v315_v9, %v317_v13  ;;  %323 = vst.msk [vmem:[#allocation2 + $0x68] sm:$0xc0] %vm75_vm11, %v317_v13  ;;  %v332_v16 = vpop.permute.xlu0 %331  ;;  %vm1788_vm13 = vcmask 523264  }
  0x89   :  { %325 = vst.msk [vmem:[#allocation2 + $0x78] sm:$0x1] %vm78_vm12, %v317_v13  ;;  %322 = vst [vmem:[#allocation2 + $0x70] ss:$-12 sps:$4 sm:$0xc1] %v319_v15   ;;  %798 = vrot.lane.b32.xlu1 %v795_v10, %s1258_s17 }
  0x8a   :  { %810 = vrot.lane.b32.xlu0 %v808_v14, %s1259_s23  ;;  %v1125_v13 = vld [vmem:[%s1783_s0 + $0x8] sm:$0x77] }
  0x8b   :  { %v334_v20 = vpop.permute.xlu1 %333  ;;  %v432_v21 = vld [vmem:[#allocation2 + $0x88] sm:$0xff] }
  0x8c   :  { %v336_v23 = vsel %vm1787_vm15, %v332_v16, %v334_v20  ;;  %340 = vst.msk [vmem:[#allocation2 + $0x78] sm:$0xe] %vm94_vm14, %v334_v20  ;;  %459 = vmatprep.subr.mxu0 %v432_v21  ;;  %v431_v24 = vld [vmem:[#allocation2 + $0x80] sm:$0xff]  ;;  %v345_v25 = vpop.permute.xlu0 %344  ;;  %vm1790_vm15 = vcmask 646144   ;;  %v696_v16 = vrot.slane %v1130_v6, 3  ;;  %v697_v20 = vrot.slane %v695_v12, 3 }
  0x8d   :  { %339 = vst [vmem:[#allocation2 + $0x70] sm:$0xe] %v336_v23  ;;  %460 = vmatpush1.msra.mxu0 %v431_v24  ;;  %812 = vrot.lane.b32.xlu1 %v809_v17, %s1259_s23  ;;  %v623_v21 = vcombine.high %v1125_v13, %v1125_v13 }
  0x8e   :  { %50 = vrot.lane.b32.xlu0 %v48_v22, %s1271_s6  ;;  %v1126_v22 = vld [vmem:[%s1783_s0 + $0x8] sm:$0x77] }
  0x8f   :  { %v347_v29 = vpop.permute.xlu1 %346 }
  0x90   :  { %v349_v31 = vsel %vm1788_vm13, %v345_v25, %v347_v29  ;;  %353 = vst.msk [vmem:[#allocation2 + $0x78] sm:$0x70] %vm108_vm0, %v347_v29  ;;  %v285_v32 = vpop.permute.xlu0 %284  ;;  %vm59_vm13 = vcmask 488451   ;;  %v624_v25 = vrot.slane %v1125_v13, 2  ;;  %v625_v29 = vrot.slane %v623_v21, 2 }
  0x91   :  { %352 = vst [vmem:[#allocation2 + $0x70] sm:$0x70] %v349_v31  ;;  %52 = vrot.lane.b32.xlu1 %v49_v26, %s1271_s6 }
  0x92   :  { %738 = vrot.lane.b32.xlu0 %v736_v30, %s1260_s29  ;;  %v639_v30 = vcombine.high %v1126_v22, %v1126_v22 }
  0x93   :  { %v287_v35 = vpop.permute.xlu1 %286 }
  0x94   :  { %v289_v37 = vsel %vm1790_vm15, %v285_v32, %v287_v35  ;;  %293 = vst.msk [vmem:[#allocation2 + $0x68] sm:$0x7] %vm43_vm1, %v287_v35  ;;  %v300_v39 = vpop.permute.xlu0 %299  ;;  %vm1792_vm15 = vcmask 760832   ;;  %v640_v32 = vrot.slane %v1126_v22, 7 }
  0x95   :  { %292 = vst [vmem:[#allocation2 + $0x60] sm:$0x7] %v289_v37  ;;  %740 = vrot.lane.b32.xlu1 %v737_v33, %s1260_s29  ;;  %v1124_v37 = vld [vmem:[%s1783_s0 + $0x8] sm:$0x77] }
  0x96   :  { %754 = vrot.lane.b32.xlu0 %v752_v36, %s1261_s7  ;;  %v641_v36 = vrot.slane %v639_v30, 7 }
  0x97   :  { %v302_v41 = vpop.permute.xlu1 %301  ;;  %v430_v42 = vld [vmem:[#allocation2 + $0x78] sm:$0xff] }
  0x98   :  { %v304_v44 = vsel %vm1791_vm10, %v300_v39, %v302_v41  ;;  %308 = vst.msk [vmem:[#allocation2 + $0x68] sm:$0x38] %vm59_vm13, %v302_v41  ;;  %461 = vmatprep.subr.mxu0 %v430_v42  ;;  %v429_v45 = vld [vmem:[#allocation2 + $0x70] sm:$0xff]  ;;  %v240_v46 = vpop.permute.xlu0 %239  ;;  %vm260_vm10 = vcmask 752640   ;;  %v653_v39 = vcombine.low %v1127_v34, %v1127_v34  ;;  %v609_v42 = vcombine.high %v1124_v37, %v1124_v37 }
  0x99   :  { %307 = vst [vmem:[#allocation2 + $0x60] sm:$0x38] %v304_v44  ;;  %462 = vmatpush1.msra.mxu0 %v429_v45  ;;  %756 = vrot.lane.b32.xlu1 %v753_v40, %s1261_s7  ;;  %v610_v45 = vrot.slane %v1124_v37, 5  ;;  %s1275_s7 = smov 104  }
  0x9a   :  { %766 = vrot.lane.b32.xlu0 %v765_v43, %s1262_s10 }
  0x9b   :  { %v242_v49 = vpop.permute.xlu1 %241 }
  0x9c   :  { %v244_v50 = vsel %vm1792_vm15, %v240_v46, %v242_v49  ;;  %248 = vst.msk [vmem:[#allocation2 + $0x48] sm:$0x80] %vm124_vm3, %v242_v49  ;;  %v257_v51 = vpop.permute.xlu0 %256  ;;  %vm1793_vm15 = vcmask 654336  }
  0x9d   :  { %250 = vst.msk [vmem:[#allocation2 + $0x58] sm:$0x3] %vm127_vm4, %v242_v49  ;;  %247 = vst [vmem:[#allocation2 + $0x50] ss:$-12 sps:$4 sm:$0x83] %v244_v50   ;;  %768 = vrot.lane.b32.xlu1 %v1135_v38, %s1262_s10  ;;  %v611_v49 = vrot.slane %v609_v42, 5 }
  0x9e   :  { %710 = vrot.lane.b32.xlu0 %v1131_v47, %s1263_s21 }
  0x9f   :  { %v259_v55 = vpop.permute.xlu1 %258  ;;  %v428_v56 = vld [vmem:[#allocation2 + $0x68] sm:$0xff] }
  0xa0   :  { %v261_v58 = vsel %vm260_vm10, %v257_v51, %v259_v55  ;;  %265 = vst.msk [vmem:[#allocation2 + $0x58] sm:$0x1c] %vm143_vm6, %v259_v55  ;;  %463 = vmatprep.subr.mxu0 %v428_v56  ;;  %v427_v59 = vld [vmem:[#allocation2 + $0x60] sm:$0xff]  ;;  %v272_v60 = vpop.permute.xlu0 %271 }
  0xa1   :  { %264 = vst [vmem:[#allocation2 + $0x50] sm:$0x1c] %v261_v58  ;;  %464 = vmatpush1.msra.mxu0 %v427_v59  ;;  %712 = vrot.lane.b32.xlu1 %v709_v52, %s1263_s21  ;;  %s1277_s21 = smov 84  }
  0xa2   :  { %724 = vrot.lane.b32.xlu0 %v722_v57, %s1264_s3 }
  0xa3   :  { %v274_v0 = vpop.permute.xlu1 %273 }
  0xa4   :  { %v276_v2 = vsel %vm1793_vm15, %v272_v60, %v274_v0  ;;  %280 = vst.msk [vmem:[#allocation2 + $0x58] sm:$0xe0] %vm159_vm9, %v274_v0  ;;  %v935_v3 = vpop.permute.xlu0 %934  ;;  %vm1794_vm15 = vcmask 785408  }
  0xa5   :  { %279 = vst [vmem:[#allocation2 + $0x50] sm:$0xe0] %v276_v2  ;;  %726 = vrot.lane.b32.xlu1 %v723_v61, %s1264_s3 }
  0xa6   :  { %668 = vrot.lane.b32.xlu0 %v666_v1, %s1265_s18 }
  0xa7   :  { %v937_v7 = vpop.permute.xlu1 %936 }
  0xa8   :  { %v938_v9 = vsel %vm408_vm2, %v935_v3, %v937_v7  ;;  %942 = vst.msk [vmem:[#allocation2 + $0x98] sm:$0x7] %vm43_vm1, %v937_v7  ;;  %v195_v10 = vpop.permute.xlu0 %194  ;;  %vm215_vm2 = vcmask 777216  }
  0xa9   :  { %941 = vst [vmem:[#allocation2 + $0x90] sm:$0x7] %v938_v9  ;;  %670 = vrot.lane.b32.xlu1 %v667_v4, %s1265_s18 }
  0xaa   :  { %684 = vrot.lane.b32.xlu0 %v682_v8, %s1266_s28 }
  0xab   :  { %v197_v14 = vpop.permute.xlu1 %196  ;;  %v426_v15 = vld [vmem:[#allocation2 + $0x58] sm:$0xff] }
  0xac   :  { %v199_v17 = vsel %vm1794_vm15, %v195_v10, %v197_v14  ;;  %203 = vst.msk [vmem:[#allocation2 + $0x38] sm:$0xc0] %vm75_vm11, %v197_v14  ;;  %465 = vmatprep.subr.mxu0 %v426_v15  ;;  %v425_v18 = vld [vmem:[#allocation2 + $0x50] sm:$0xff]  ;;  %v212_v19 = vpop.permute.xlu0 %211  ;;  %vm228_vm15 = vcmask 769024  }
  0xad   :  { %205 = vst.msk [vmem:[#allocation2 + $0x48] sm:$0x1] %vm78_vm12, %v197_v14  ;;  %202 = vst [vmem:[#allocation2 + $0x40] ss:$-12 sps:$4 sm:$0xc1] %v199_v17   ;;  %466 = vmatpush1.msra.mxu0 %v425_v18  ;;  %686 = vrot.lane.b32.xlu1 %v683_v11, %s1266_s28 }
  0xae   :  { %698 = vrot.lane.b32.xlu0 %v696_v16, %s1267_s16 }
  0xaf   :  { %v214_v23 = vpop.permute.xlu1 %213  ;;  %v963_v24 = vld [vmem:[#allocation2 + $0x98] sm:$0xf] }
  0xb0   :  { %v216_v26 = vsel %vm215_vm2, %v212_v19, %v214_v23  ;;  %220 = vst.msk [vmem:[#allocation2 + $0x48] sm:$0xe] %vm94_vm14, %v214_v23  ;;  %1148 = vmatprep.subr.msk.mxu1 %vm438_vm8, %v963_v24  ;;  %v962_v27 = vld [vmem:[#allocation2 + $0x90] sm:$0xf]  ;;  %v225_v28 = vpop.permute.xlu0 %224 }
  0xb1   :  { %219 = vst [vmem:[#allocation2 + $0x40] sm:$0xe] %v216_v26  ;;  %1149 = vmatpush1.msk.msra.mxu1 %vm438_vm8, %v962_v27  ;;  %700 = vrot.lane.b32.xlu1 %v697_v20, %s1267_s16  ;;  %vm1796_vm8 = vcmask 883712  }
  0xb2   :  { %626 = vrot.lane.b32.xlu0 %v624_v25, %s1268_s15 }
  0xb3   :  { %v227_v31 = vpop.permute.xlu1 %226 }
  0xb4   :  { %v229_v33 = vsel %vm228_vm15, %v225_v28, %v227_v31  ;;  %233 = vst.msk [vmem:[#allocation2 + $0x48] sm:$0x70] %vm108_vm0, %v227_v31  ;;  %v893_v35 = vpop.permute.xlu0 %892 }
  0xb5   :  { %232 = vst [vmem:[#allocation2 + $0x40] sm:$0x70] %v229_v33  ;;  %628 = vrot.lane.b32.xlu1 %v625_v29, %s1268_s15 }
  0xb6   :  { %642 = vrot.lane.b32.xlu0 %v640_v32, %s1269_s25 }
  0xb7   :  { %v895_v38 = vpop.permute.xlu1 %894 }
  0xb8   :  { %v896_v40 = vsel %vm363_vm5, %v893_v35, %v895_v38  ;;  %900 = vst.msk [vmem:[#allocation2 + $0x78] sm:$0x80] %vm124_vm3, %v895_v38  ;;  %v909_v41 = vpop.permute.xlu0 %908  ;;  %vm1802_vm5 = vcmask 498688  }
  0xb9   :  { %902 = vst.msk [vmem:[#allocation2 + $0x88] sm:$0x3] %vm127_vm4, %v895_v38  ;;  %899 = vst [vmem:[#allocation2 + $0x80] ss:$-12 sps:$4 sm:$0x83] %v896_v40   ;;  %644 = vrot.lane.b32.xlu1 %v641_v36, %s1269_s25 }
  0xba   :  { %654 = vrot.lane.b32.xlu0 %v653_v39, %s1270_s19 }
  0xbb   :  { %v911_v43 = vpop.permute.xlu1 %910  ;;  %v424_v44 = vld [vmem:[#allocation2 + $0x48] sm:$0xff] }
  0xbc   :  { %v912_v46 = vsel %vm380_vm7, %v909_v41, %v911_v43  ;;  %916 = vst.msk [vmem:[#allocation2 + $0x88] sm:$0x1c] %vm143_vm6, %v911_v43  ;;  %467 = vmatprep.subr.mxu0 %v424_v44  ;;  %v423_v47 = vld [vmem:[#allocation2 + $0x40] sm:$0xff]  ;;  %v923_v48 = vpop.permute.xlu0 %922  ;;  %vm1795_vm7 = vcmask 891904  }
  0xbd   :  { %915 = vst [vmem:[#allocation2 + $0x80] sm:$0x1c] %v912_v46  ;;  %468 = vmatpush1.msra.mxu0 %v423_v47  ;;  %656 = vrot.lane.b32.xlu1 %v1127_v34, %s1270_s19 }
  0xbe   :  { %612 = vrot.lane.b32.xlu0 %v610_v45, %s1271_s6 }
  0xbf   :  { %v925_v50 = vpop.permute.xlu1 %924 }
  0xc0   :  { %v926_v51 = vsel %vm1802_vm5, %v923_v48, %v925_v50  ;;  %930 = vst.msk [vmem:[#allocation2 + $0x88] sm:$0xe0] %vm159_vm9, %v925_v50  ;;  %v165_v52 = vpop.permute.xlu0 %164  ;;  %vm1803_vm5 = vcmask 629760  }
  0xc1   :  { %929 = vst [vmem:[#allocation2 + $0x80] sm:$0xe0] %v926_v51  ;;  %614 = vrot.lane.b32.xlu1 %v611_v49, %s1271_s6 }
  0xc3   :  { %v167_v53 = vpop.permute.xlu1 %166 }
  0xc4   :  { %v169_v54 = vsel %vm1795_vm7, %v165_v52, %v167_v53  ;;  %173 = vst.msk [vmem:[#allocation2 + $0x38] sm:$0x7] %vm43_vm1, %v167_v53  ;;  %v180_v55 = vpop.permute.xlu0 %179  ;;  %vm1804_vm7 = vcmask 621568   ;;  %v1123_v52 = vld [vmem:[%s1783_s0 + $0x8] sm:$0x77] }
  0xc5   :  { %172 = vst [vmem:[#allocation2 + $0x30] sm:$0x7] %v169_v54 }
  0xc7   :  { %v182_v56 = vpop.permute.xlu1 %181  ;;  %v961_v57 = vld [vmem:[#allocation2 + $0x88] sm:$0xff] }
  0xc8   :  { %v184_v58 = vsel %vm1796_vm8, %v180_v55, %v182_v56  ;;  %188 = vst.msk [vmem:[#allocation2 + $0x38] sm:$0x38] %vm59_vm13, %v182_v56  ;;  %987 = vmatprep.subr.mxu1 %v961_v57  ;;  %v960_v59 = vld [vmem:[#allocation2 + $0x80] sm:$0xff]  ;;  %v851_v60 = vpop.permute.xlu0 %850  ;;  %vm1805_vm8 = vcmask 523264   ;;  %v603_v57 = vcombine.high %v1123_v52, %v1123_v52 }
  0xc9   :  { %187 = vst [vmem:[#allocation2 + $0x30] sm:$0x38] %v184_v58  ;;  %988 = vmatpush1.msra.mxu1 %v960_v59 }
  0xcb   :  { %v853_v61 = vpop.permute.xlu1 %852 }
  0xcc   :  { %v854_v62 = vsel %vm1803_vm5, %v851_v60, %v853_v61  ;;  %858 = vst.msk [vmem:[#allocation2 + $0x68] sm:$0xc0] %vm75_vm11, %v853_v61  ;;  %v867_v63 = vpop.permute.xlu0 %866  ;;  %vm1797_vm5 = vcmask 916480  }
  0xcd   :  { %860 = vst.msk [vmem:[#allocation2 + $0x78] sm:$0x1] %vm78_vm12, %v853_v61  ;;  %857 = vst [vmem:[#allocation2 + $0x70] ss:$-12 sps:$4 sm:$0xc1] %v854_v62  }
  0xce   :  { %v414_v61 = vld [vmem:[%s1784_s1] sm:$0x3f] }
  0xcf   :  { %v869_v0 = vpop.permute.xlu1 %868  ;;  %v422_v1 = vld [vmem:[#allocation2 + $0x38] sm:$0xff] }
  0xd0   :  { %v870_v2 = vsel %vm1804_vm7, %v867_v63, %v869_v0  ;;  %874 = vst.msk [vmem:[#allocation2 + $0x78] sm:$0xe] %vm94_vm14, %v869_v0  ;;  %469 = vmatprep.subr.mxu0 %v422_v1  ;;  %v421_v3 = vld [vmem:[#allocation2 + $0x30] sm:$0xff]  ;;  %v879_v4 = vpop.permute.xlu0 %878  ;;  %vm1798_vm7 = vcmask 908288  }
  0xd1   :  { %873 = vst [vmem:[#allocation2 + $0x70] sm:$0xe] %v870_v2  ;;  %470 = vmatpush1.msra.mxu0 %v421_v3 }
  0xd3   :  { %v881_v5 = vpop.permute.xlu1 %880 }
  0xd4   :  { %v882_v6 = vsel %vm1805_vm8, %v879_v4, %v881_v5  ;;  %886 = vst.msk [vmem:[#allocation2 + $0x78] sm:$0x70] %vm108_vm0, %v881_v5  ;;  %v116_v7 = vpop.permute.xlu0 %115  ;;  %vm1799_vm8 = vcmask 900096  }
  0xd5   :  { %885 = vst [vmem:[#allocation2 + $0x70] sm:$0x70] %v882_v6 }
  0xd7   :  { %v118_v8 = vpop.permute.xlu1 %117 }
  0xd8   :  { %v120_v9 = vsel %vm1797_vm5, %v116_v7, %v118_v8  ;;  %125 = vst.msk [vmem:[#allocation2 + $0x18] sm:$0x80] %vm124_vm3, %v118_v8  ;;  %v135_v10 = vpop.permute.xlu0 %134  ;;  %vm1806_vm5 = vcmask 646144  }
  0xd9   :  { %128 = vst.msk [vmem:[#allocation2 + $0x28] sm:$0x3] %vm127_vm4, %v118_v8  ;;  %123 = vst [vmem:[#allocation2 + $0x20] ss:$-12 sps:$4 sm:$0x83] %v120_v9  }
  0xdb   :  { %v137_v11 = vpop.permute.xlu1 %136  ;;  %v959_v12 = vld [vmem:[#allocation2 + $0x78] sm:$0xff] }
  0xdc   :  { %v139_v13 = vsel %vm1798_vm7, %v135_v10, %v137_v11  ;;  %144 = vst.msk [vmem:[#allocation2 + $0x28] sm:$0x1c] %vm143_vm6, %v137_v11  ;;  %989 = vmatprep.subr.mxu1 %v959_v12  ;;  %v958_v14 = vld [vmem:[#allocation2 + $0x70] sm:$0xff]  ;;  %v151_v15 = vpop.permute.xlu0 %150  ;;  %vm1807_vm7 = vcmask 637952  }
  0xdd   :  { %142 = vst [vmem:[#allocation2 + $0x20] sm:$0x1c] %v139_v13  ;;  %990 = vmatpush1.msra.mxu1 %v958_v14 }
  0xdf   :  { %v153_v16 = vpop.permute.xlu1 %152 }
  0xe0   :  { %v155_v17 = vsel %vm1799_vm8, %v151_v15, %v153_v16  ;;  %160 = vst.msk [vmem:[#allocation2 + $0x28] sm:$0xe0] %vm159_vm9, %v153_v16  ;;  %v823_v18 = vpop.permute.xlu0 %822  ;;  %vm1800_vm8 = vcmask 1031168  }
  0xe1   :  { %158 = vst [vmem:[#allocation2 + $0x20] sm:$0xe0] %v155_v17 }
  0xe3   :  { %v825_v19 = vpop.permute.xlu1 %824 }
  0xe4   :  { %v826_v20 = vsel %vm1806_vm5, %v823_v18, %v825_v19  ;;  %830 = vst.msk [vmem:[#allocation2 + $0x68] sm:$0x7] %vm43_vm1, %v825_v19  ;;  %v837_v21 = vpop.permute.xlu0 %836  ;;  %vm89_vm5 = vcmask 1022976  }
  0xe5   :  { %829 = vst [vmem:[#allocation2 + $0x60] sm:$0x7] %v826_v20 }
  0xe7   :  { %v839_v22 = vpop.permute.xlu1 %838  ;;  %v420_v23 = vld [vmem:[#allocation2 + $0x28] sm:$0xff] }
  0xe8   :  { %v840_v24 = vsel %vm1807_vm7, %v837_v21, %v839_v22  ;;  %844 = vst.msk [vmem:[#allocation2 + $0x68] sm:$0x38] %vm59_vm13, %v839_v22  ;;  %471 = vmatprep.subr.mxu0 %v420_v23  ;;  %v419_v25 = vld [vmem:[#allocation2 + $0x20] sm:$0xff]  ;;  %v67_v26 = vpop.permute.xlu0 %66  ;;  %vm1801_vm7 = vcmask 1014784  }
  0xe9   :  { %843 = vst [vmem:[#allocation2 + $0x60] sm:$0x38] %v840_v24  ;;  %472 = vmatpush1.msra.mxu0 %v419_v25 }
  0xeb   :  { %v69_v27 = vpop.permute.xlu1 %68 }
  0xec   :  { %v71_v28 = vsel %vm1800_vm8, %v67_v26, %v69_v27  ;;  %76 = vst.msk [vmem:[#allocation2 + $0x8] sm:$0xc0] %vm75_vm11, %v69_v27  ;;  %v86_v29 = vpop.permute.xlu0 %85  ;;  %vm1808_vm8 = vcmask 760832  }
  0xed   :  { %79 = vst.msk [vmem:[#allocation2 + $0x18] sm:$0x1] %vm78_vm12, %v69_v27  ;;  %74 = vst [vmem:[#allocation2 + $0x10] ss:$-12 sps:$4 sm:$0xc1] %v71_v28  }
  0xef   :  { %v88_v30 = vpop.permute.xlu1 %87  ;;  %v957_v31 = vld [vmem:[#allocation2 + $0x68] sm:$0xff] }
  0xf0   :  { %v90_v32 = vsel %vm89_vm5, %v86_v29, %v88_v30  ;;  %95 = vst.msk [vmem:[#allocation2 + $0x18] sm:$0xe] %vm94_vm14, %v88_v30  ;;  %991 = vmatprep.subr.mxu1 %v957_v31  ;;  %v956_v33 = vld [vmem:[#allocation2 + $0x60] sm:$0xff]  ;;  %v100_v34 = vpop.permute.xlu0 %99 }
  0xf1   :  { %93 = vst [vmem:[#allocation2 + $0x10] sm:$0xe] %v90_v32  ;;  %992 = vmatpush1.msra.mxu1 %v956_v33 }
  0xf3   :  { %v102_v35 = vpop.permute.xlu1 %101 }
  0xf4   :  { %v104_v36 = vsel %vm1801_vm7, %v100_v34, %v102_v35  ;;  %109 = vst.msk [vmem:[#allocation2 + $0x18] sm:$0x70] %vm108_vm0, %v102_v35  ;;  %v781_v37 = vpop.permute.xlu0 %780  ;;  %vm1809_vm7 = vcmask 654336  }
  0xf5   :  { %107 = vst [vmem:[#allocation2 + $0x10] sm:$0x70] %v104_v36 }
  0xf7   :  { %v783_v38 = vpop.permute.xlu1 %782 }
  0xf8   :  { %v784_v39 = vsel %vm1808_vm8, %v781_v37, %v783_v38  ;;  %788 = vst.msk [vmem:[#allocation2 + $0x48] sm:$0x80] %vm124_vm3, %v783_v38  ;;  %v797_v40 = vpop.permute.xlu0 %796  ;;  %vm54_vm8 = vcmask 1039360  }
  0xf9   :  { %790 = vst.msk [vmem:[#allocation2 + $0x58] sm:$0x3] %vm127_vm4, %v783_v38  ;;  %787 = vst [vmem:[#allocation2 + $0x50] ss:$-12 sps:$4 sm:$0x83] %v784_v39  }
  0xfa   :  { %v943_v39 = vld [vmem:[%s1784_s1] sm:$0x3f]  ;;  %s1272_s1 = smov 88  }
  0xfb   :  { %v799_v41 = vpop.permute.xlu1 %798  ;;  %v418_v42 = vld [vmem:[#allocation2 + $0x18] sm:$0xff] }
  0xfc   :  { %v800_v43 = vsel %vm260_vm10, %v797_v40, %v799_v41  ;;  %804 = vst.msk [vmem:[#allocation2 + $0x58] sm:$0x1c] %vm143_vm6, %v799_v41  ;;  %473 = vmatprep.subr.mxu0 %v418_v42  ;;  %v417_v44 = vld [vmem:[#allocation2 + $0x10] sm:$0xff]  ;;  %v811_v45 = vpop.permute.xlu0 %810  ;;  %vm1810_vm10 = vcmask 785408  }
  0xfd   :  { %803 = vst [vmem:[#allocation2 + $0x50] sm:$0x1c] %v800_v43  ;;  %474 = vmatpush1.msra.mxu0 %v417_v44 }
  0xff   :  { %v813_v46 = vpop.permute.xlu1 %812 }
 0x100   :  { %v814_v47 = vsel %vm1809_vm7, %v811_v45, %v813_v46  ;;  %818 = vst.msk [vmem:[#allocation2 + $0x58] sm:$0xe0] %vm159_vm9, %v813_v46  ;;  %v51_v48 = vpop.permute.xlu0 %50  ;;  %vm1811_vm7 = vcmask 621568  }
 0x101   :  { %817 = vst [vmem:[#allocation2 + $0x50] sm:$0xe0] %v814_v47 }
 0x103   :  { %v53_v49 = vpop.permute.xlu1 %52 }
 0x104   :  { %v55_v50 = vsel %vm54_vm8, %v51_v48, %v53_v49  ;;  %60 = vst.msk [vmem:[#allocation2 + $0x8] sm:$0x38] %vm59_vm13, %v53_v49  ;;  %v739_v51 = vpop.permute.xlu0 %738 }
 0x105   :  { %58 = vst [vmem:[#allocation2] sm:$0x38] %v55_v50 }
 0x107   :  { %v741_v53 = vpop.permute.xlu1 %740  ;;  %v955_v54 = vld [vmem:[#allocation2 + $0x58] sm:$0xff] }
 0x108   :  { %v742_v55 = vsel %vm1810_vm10, %v739_v51, %v741_v53  ;;  %746 = vst.msk [vmem:[#allocation2 + $0x38] sm:$0xc0] %vm75_vm11, %v741_v53  ;;  %993 = vmatprep.subr.mxu1 %v955_v54  ;;  %v954_v56 = vld [vmem:[#allocation2 + $0x50] sm:$0xff]  ;;  %v755_v58 = vpop.permute.xlu0 %754  ;;  %vm1813_vm10 = vcmask 883712  }
 0x109   :  { %748 = vst.msk [vmem:[#allocation2 + $0x48] sm:$0x1] %vm78_vm12, %v741_v53  ;;  %745 = vst [vmem:[#allocation2 + $0x40] ss:$-12 sps:$4 sm:$0xc1] %v742_v55   ;;  %994 = vmatpush1.msra.mxu1 %v954_v56 }
 0x10b   :  { %v757_v59 = vpop.permute.xlu1 %756  ;;  %v416_v60 = vld [vmem:[#allocation2 + $0x8] sm:$0xff] }
 0x10c   :  { %v758_v62 = vsel %vm215_vm2, %v755_v58, %v757_v59  ;;  %762 = vst.msk [vmem:[#allocation2 + $0x48] sm:$0xe] %vm94_vm14, %v757_v59  ;;  %475 = vmatprep.subr.mxu0 %v416_v60  ;;  %v415_v63 = vld [vmem:[#allocation2] sm:$0xff]  ;;  %v767_v0 = vpop.permute.xlu0 %766  ;;  %vm1812_vm2 = vcmask 891904  }
 0x10d   :  { %606 = vst.msk [vmem:[#allocation2 + $0x8] sm:$0x7] %vm43_vm1, %v603_v57  ;;  %761 = vst [vmem:[#allocation2 + $0x40] sm:$0xe] %v758_v62  ;;  %476 = vmatpush1.msra.mxu0 %v415_v63 }
 0x10e   :  { %605 = vst [vmem:[#allocation2] sm:$0x7] %v1123_v52  ;;  %1122 = vmatmul.mubr.msk.f32.vlgmr.msra.gmra.mxu0 %vm1811_vm7, %v414_v61  ;;  %vm1816_vm7 = vcmask 900096  }
 0x10f   :  { %v769_v1 = vpop.permute.xlu1 %768 }
 0x110   :  { %v770_v2 = vsel %vm228_vm15, %v767_v0, %v769_v1  ;;  %774 = vst.msk [vmem:[#allocation2 + $0x48] sm:$0x70] %vm108_vm0, %v769_v1  ;;  %v711_v3 = vpop.permute.xlu0 %710  ;;  %vm1814_vm15 = vcmask 916480  }
 0x111   :  { %773 = vst [vmem:[#allocation2 + $0x40] sm:$0x70] %v770_v2 }
 0x113   :  { %v713_v4 = vpop.permute.xlu1 %712 }
 0x114   :  { %v714_v5 = vsel %vm1812_vm2, %v711_v3, %v713_v4  ;;  %718 = vst.msk [vmem:[#allocation2 + $0x38] sm:$0x7] %vm43_vm1, %v713_v4  ;;  %v725_v6 = vpop.permute.xlu0 %724  ;;  %vm1815_vm1 = vcmask 908288   ;;  %vm568_vm2 = vcmask 784032  }
 0x115   :  { %717 = vst [vmem:[#allocation2 + $0x30] sm:$0x7] %v714_v5 }
 0x117   :  { %v727_v7 = vpop.permute.xlu1 %726  ;;  %v953_v8 = vld [vmem:[#allocation2 + $0x48] sm:$0xff] }
 0x118   :  { %v728_v9 = vsel %vm1813_vm10, %v725_v6, %v727_v7  ;;  %732 = vst.msk [vmem:[#allocation2 + $0x38] sm:$0x38] %vm59_vm13, %v727_v7  ;;  %995 = vmatprep.subr.mxu1 %v953_v8  ;;  %v952_v10 = vld [vmem:[#allocation2 + $0x40] sm:$0xff]  ;;  %v669_v11 = vpop.permute.xlu0 %668  ;;  %vm575_vm10 = vcmask 882432  }
 0x119   :  { %731 = vst [vmem:[#allocation2 + $0x30] sm:$0x38] %v728_v9  ;;  %996 = vmatpush1.msra.mxu1 %v952_v10 }
 0x11b   :  { %v671_v12 = vpop.permute.xlu1 %670 }
 0x11c   :  { %v672_v13 = vsel %vm1814_vm15, %v669_v11, %v671_v12  ;;  %676 = vst.msk [vmem:[#allocation2 + $0x18] sm:$0x80] %vm124_vm3, %v671_v12  ;;  %v685_v14 = vpop.permute.xlu0 %684  ;;  %vm1817_vm3 = vcmask 1031168   ;;  %vm582_vm15 = vcmask 980832  }
 0x11d   :  { %678 = vst.msk [vmem:[#allocation2 + $0x28] sm:$0x3] %vm127_vm4, %v671_v12  ;;  %675 = vst [vmem:[#allocation2 + $0x20] ss:$-12 sps:$4 sm:$0x83] %v672_v13   ;;  %vm1818_vm4 = vcmask 1014784  }
 0x11f   :  { %v687_v15 = vpop.permute.xlu1 %686  ;;  %v951_v16 = vld [vmem:[#allocation2 + $0x38] sm:$0xff] }
 0x120   :  { %v688_v17 = vsel %vm1815_vm1, %v685_v14, %v687_v15  ;;  %692 = vst.msk [vmem:[#allocation2 + $0x28] sm:$0x1c] %vm143_vm6, %v687_v15  ;;  %997 = vmatprep.subr.mxu1 %v951_v16  ;;  %v950_v18 = vld [vmem:[#allocation2 + $0x30] sm:$0xff]  ;;  %v699_v19 = vpop.permute.xlu0 %698  ;;  %vm1819_vm6 = vcmask 621568   ;;  %vm589_vm1 = vcmask 1046464  }
 0x121   :  { %691 = vst [vmem:[#allocation2 + $0x20] sm:$0x1c] %v688_v17  ;;  %998 = vmatpush1.msra.mxu1 %v950_v18 }
 0x123   :  { %v701_v20 = vpop.permute.xlu1 %700 }
 0x124   :  { %v702_v21 = vsel %vm1816_vm7, %v699_v19, %v701_v20  ;;  %706 = vst.msk [vmem:[#allocation2 + $0x28] sm:$0xe0] %vm159_vm9, %v701_v20  ;;  %v627_v22 = vpop.permute.xlu0 %626  ;;  %vm519_vm9 = vcmask 95232   ;;  %vm598_vm7 = vcmask 128032  }
 0x125   :  { %705 = vst [vmem:[#allocation2 + $0x20] sm:$0xe0] %v702_v21 }
 0x127   :  { %v629_v23 = vpop.permute.xlu1 %628 }
 0x128   :  { %v630_v24 = vsel %vm1817_vm3, %v627_v22, %v629_v23  ;;  %634 = vst.msk [vmem:[#allocation2 + $0x8] sm:$0xc0] %vm75_vm11, %v629_v23  ;;  %v643_v25 = vpop.permute.xlu0 %642  ;;  %vm526_vm11 = vcmask 193632  }
 0x129   :  { %636 = vst.msk [vmem:[#allocation2 + $0x18] sm:$0x1] %vm78_vm12, %v629_v23  ;;  %633 = vst [vmem:[#allocation2 + $0x10] ss:$-12 sps:$4 sm:$0xc1] %v630_v24   ;;  %vm591_vm12 = vcmask 29696  }
 0x12b   :  { %v645_v26 = vpop.permute.xlu1 %644  ;;  %v949_v27 = vld [vmem:[#allocation2 + $0x28] sm:$0xff] }
 0x12c   :  { %v646_v28 = vsel %vm89_vm5, %v643_v25, %v645_v26  ;;  %650 = vst.msk [vmem:[#allocation2 + $0x18] sm:$0xe] %vm94_vm14, %v645_v26  ;;  %999 = vmatprep.subr.mxu1 %v949_v27  ;;  %v948_v29 = vld [vmem:[#allocation2 + $0x20] sm:$0xff]  ;;  %v655_v30 = vpop.permute.xlu0 %654  ;;  %vm540_vm14 = vcmask 390432   ;;  %vm554_vm5 = vcmask 587232  }
 0x12d   :  { %649 = vst [vmem:[#allocation2 + $0x10] sm:$0xe] %v646_v28  ;;  %1000 = vmatpush1.msra.mxu1 %v948_v29 }
 0x12f   :  { %v657_v31 = vpop.permute.xlu1 %656 }
 0x130   :  { %v658_v32 = vsel %vm1818_vm4, %v655_v30, %v657_v31  ;;  %662 = vst.msk [vmem:[#allocation2 + $0x18] sm:$0x70] %vm108_vm0, %v657_v31  ;;  %v613_v33 = vpop.permute.xlu0 %612  ;;  %vm547_vm0 = vcmask 488832  }
 0x131   :  { %661 = vst [vmem:[#allocation2 + $0x10] sm:$0x70] %v658_v32 }
 0x133   :  { %v615_v34 = vpop.permute.xlu1 %614 }
 0x134   :  { %v616_v35 = vsel %vm54_vm8, %v613_v33, %v615_v34  ;;  %620 = vst.msk [vmem:[#allocation2 + $0x8] sm:$0x38] %vm59_vm13, %v615_v34  ;;  %vm533_vm13 = vcmask 292032   ;;  %vm561_vm8 = vcmask 685632  }
 0x135   :  { %619 = vst [vmem:[#allocation2] sm:$0x38] %v616_v35 }
 0x137   :  { %v947_v36 = vld [vmem:[#allocation2 + $0x18] sm:$0xff] }
 0x138   :  { %1001 = vmatprep.subr.mxu1 %v947_v36  ;;  %v946_v37 = vld [vmem:[#allocation2 + $0x10] sm:$0xff] }
 0x139   :  { %1002 = vmatpush1.msra.mxu1 %v946_v37 }
 0x13b   :  { %v945_v38 = vld [vmem:[#allocation2 + $0x8] sm:$0xff] }
 0x13c   :  { %1003 = vmatprep.subr.mxu1 %v945_v38  ;;  %v944_v40 = vld [vmem:[#allocation2] sm:$0xff] }
 0x13d   :  { %1004 = vmatpush1.msra.mxu1 %v944_v40 }
 0x13e   :  { %1150 = vmatmul.mubr.msk.f32.vlgmr.msra.gmra.mxu1 %vm1819_vm6, %v943_v39 }
 0x1ce   :  { %v511_v41 = vpop.f32.mrf.mxu0 }
 0x1cf   :  { %516 = vst [vmem:[#allocation3] sm:$0x3f] %v511_v41 }
 0x1d0   :  { %v513_v42 = vpop.f32.mrf.mxu0 }
 0x1d1   :  { %517 = vst [vmem:[#allocation3 + $0x8] sm:$0x3f] %v513_v42 }
 0x1d6   :  { %v518_v43 = vld [vmem:[#allocation3] sm:$0x3f] }
 0x1d7   :  { %v521_v44 = vld [vmem:[#allocation3] sm:$0x3f]  ;;  %520 = vst.msk [vmem:[%s1785_s2] sm:$0x3f] %vm519_vm9, %v518_v43 }
 0x1d8   :  { %523 = vrot.lane.b32.xlu0 %v521_v44, %s1270_s19  ;;  %v528_v45 = vld [vmem:[#allocation3] sm:$0x3f]  ;;  %v584_v46 = vld [vmem:[#allocation3 + $0x8] sm:$0x3f] }
 0x1d9   :  { %586 = vrot.lane.b32.xlu1 %v584_v46, %s1272_s1  ;;  %v535_v47 = vld [vmem:[#allocation3] sm:$0x3f]  ;;  %v570_v52 = vld [vmem:[#allocation3 + $0x8] sm:$0x3f] }
 0x1da   :  { %v542_v48 = vld [vmem:[#allocation3] sm:$0x3f]  ;;  %v577_v53 = vld [vmem:[#allocation3 + $0x8] sm:$0x3f] }
 0x1db   :  { %v549_v49 = vld [vmem:[#allocation3] sm:$0x3f]  ;;  %v593_v55 = vld [vmem:[#allocation3 + $0x8] sm:$0x3f] }
 0x1dc   :  { %530 = vrot.lane.b32.xlu0 %v528_v45, %s1273_s12  ;;  %v556_v50 = vld [vmem:[#allocation3] sm:$0x3f] }
 0x1dd   :  { %v563_v51 = vld [vmem:[#allocation3] sm:$0x3f] }
 0x1e0   :  { %537 = vrot.lane.b32.xlu0 %v535_v47, %s1274_s13 }
 0x1e4   :  { %544 = vrot.lane.b32.xlu0 %v542_v48, %s1265_s18 }
 0x1e8   :  { %551 = vrot.lane.b32.xlu0 %v549_v49, %s1264_s3 }
 0x1ec   :  { %558 = vrot.lane.b32.xlu0 %v556_v50, %s1275_s7 }
 0x1f0   :  { %565 = vrot.lane.b32.xlu0 %v563_v51, %s1276_s5 }
 0x1f4   :  { %572 = vrot.lane.b32.xlu0 %v570_v52, %s1260_s29 }
 0x1f8   :  { %579 = vrot.lane.b32.xlu0 %v577_v53, %s1258_s17 }
 0x1fe   :  { %v1039_v54 = vpop.f32.mrf.mxu1 }
 0x1ff   :  { %1044 = vst [vmem:[#allocation3] sm:$0x3f] %v1039_v54 }
 0x200   :  { %v1041_v56 = vpop.f32.mrf.mxu1 }
 0x201   :  { %1045 = vst [vmem:[#allocation3 + $0x8] sm:$0x3f] %v1041_v56 }
 0x206   :  { %v1049_v57 = vld [vmem:[#allocation3] sm:$0x3f] }
 0x207   :  { %1051 = vrot.lane.b32.xlu1 %v1049_v57, %s1270_s19  ;;  %v1046_v59 = vld [vmem:[#allocation3] sm:$0x3f] }
 0x208   :  { %v1097_v58 = vld [vmem:[#allocation3 + $0x8] sm:$0x3f]  ;;  %v1055_v60 = vld [vmem:[#allocation3] sm:$0x3f]  ;;  %1151 = vst.msk [vmem:[%s1785_s2 + $0x10] sm:$0x3f] %vm519_vm9, %v1046_v59 }
 0x209   :  { %1099 = vrot.lane.b32.xlu0 %v1097_v58, %s1258_s17  ;;  %v1061_v61 = vld [vmem:[#allocation3] sm:$0x3f]  ;;  %v1091_v2 = vld [vmem:[#allocation3 + $0x8] sm:$0x3f] }
 0x20a   :  { %v1067_v62 = vld [vmem:[#allocation3] sm:$0x3f]  ;;  %v1103_v3 = vld [vmem:[#allocation3 + $0x8] sm:$0x3f] }
 0x20b   :  { %1057 = vrot.lane.b32.xlu1 %v1055_v60, %s1273_s12  ;;  %v1073_v63 = vld [vmem:[#allocation3] sm:$0x3f]  ;;  %v1110_v4 = vld [vmem:[#allocation3 + $0x8] sm:$0x3f] }
 0x20c   :  { %v1079_v0 = vld [vmem:[#allocation3] sm:$0x3f] }
 0x20d   :  { %595 = vrot.lane.b32.xlu0 %v593_v55, %s1277_s21  ;;  %v1085_v1 = vld [vmem:[#allocation3] sm:$0x3f] }
 0x20f   :  { %1063 = vrot.lane.b32.xlu1 %v1061_v61, %s1274_s13 }
 0x213   :  { %1069 = vrot.lane.b32.xlu1 %v1067_v62, %s1265_s18 }
 0x217   :  { %1075 = vrot.lane.b32.xlu1 %v1073_v63, %s1264_s3 }
 0x21b   :  { %1081 = vrot.lane.b32.xlu1 %v1079_v0, %s1275_s7 }
 0x21f   :  { %1087 = vrot.lane.b32.xlu1 %v1085_v1, %s1276_s5 }
 0x223   :  { %1093 = vrot.lane.b32.xlu1 %v1091_v2, %s1260_s29 }
 0x227   :  { %1105 = vrot.lane.b32.xlu1 %v1103_v3, %s1272_s1 }
 0x22b   :  { %1112 = vrot.lane.b32.xlu1 %v1110_v4, %s1277_s21 }
 0x24a   :  { %v524_v5 = vpop.permute.xlu0 %523 }
 0x24b   :  { %527 = vst.msk [vmem:[%s1785_s2] sm:$0x3f] %vm526_vm11, %v524_v5  ;;  %v587_v6 = vpop.permute.xlu1 %586 }
 0x24c   :  { %592 = vst.msk [vmem:[%s1785_s2 + $0x8] sm:$0x3f] %vm591_vm12, %v587_v6 }
 0x24e   :  { %v531_v7 = vpop.permute.xlu0 %530 }
 0x24f   :  { %534 = vst.msk [vmem:[%s1785_s2] sm:$0x3f] %vm533_vm13, %v531_v7 }
 0x252   :  { %v538_v8 = vpop.permute.xlu0 %537 }
 0x253   :  { %541 = vst.msk [vmem:[%s1785_s2] sm:$0x3f] %vm540_vm14, %v538_v8 }
 0x256   :  { %v545_v9 = vpop.permute.xlu0 %544 }
 0x257   :  { %548 = vst.msk [vmem:[%s1785_s2] sm:$0x3f] %vm547_vm0, %v545_v9 }
 0x25a   :  { %v552_v10 = vpop.permute.xlu0 %551 }
 0x25b   :  { %555 = vst.msk [vmem:[%s1785_s2] sm:$0x3f] %vm554_vm5, %v552_v10 }
 0x25e   :  { %v559_v11 = vpop.permute.xlu0 %558 }
 0x25f   :  { %562 = vst.msk [vmem:[%s1785_s2] sm:$0x3f] %vm561_vm8, %v559_v11 }
 0x262   :  { %v566_v12 = vpop.permute.xlu0 %565 }
 0x263   :  { %569 = vst.msk [vmem:[%s1785_s2] sm:$0x3f] %vm568_vm2, %v566_v12 }
 0x266   :  { %v573_v13 = vpop.permute.xlu0 %572 }
 0x267   :  { %576 = vst.msk [vmem:[%s1785_s2] sm:$0x3f] %vm575_vm10, %v573_v13 }
 0x26a   :  { %v580_v14 = vpop.permute.xlu0 %579 }
 0x26b   :  { %583 = vst.msk [vmem:[%s1785_s2] sm:$0x3f] %vm582_vm15, %v580_v14 }
 0x26c   :  { %590 = vst.msk [vmem:[%s1785_s2] sm:$0x3f] %vm589_vm1, %v587_v6 }
 0x279   :  { %v1052_v15 = vpop.permute.xlu1 %1051 }
 0x27a   :  { %1152 = vst.msk [vmem:[%s1785_s2 + $0x10] sm:$0x3f] %vm526_vm11, %v1052_v15 }
 0x27b   :  { %v1100_v16 = vpop.permute.xlu0 %1099 }
 0x27d   :  { %v1058_v17 = vpop.permute.xlu1 %1057 }
 0x27e   :  { %1153 = vst.msk [vmem:[%s1785_s2 + $0x10] sm:$0x3f] %vm533_vm13, %v1058_v17 }
 0x27f   :  { %v596_v18 = vpop.permute.xlu0 %595 }
 0x280   :  { %599 = vst.msk [vmem:[%s1785_s2 + $0x8] sm:$0x3f] %vm598_vm7, %v596_v18 }
 0x281   :  { %v1064_v19 = vpop.permute.xlu1 %1063 }
 0x282   :  { %1154 = vst.msk [vmem:[%s1785_s2 + $0x10] sm:$0x3f] %vm540_vm14, %v1064_v19 }
 0x285   :  { %v1070_v20 = vpop.permute.xlu1 %1069 }
 0x286   :  { %1155 = vst.msk [vmem:[%s1785_s2 + $0x10] sm:$0x3f] %vm547_vm0, %v1070_v20 }
 0x289   :  { %v1076_v21 = vpop.permute.xlu1 %1075 }
 0x28a   :  { %1156 = vst.msk [vmem:[%s1785_s2 + $0x10] sm:$0x3f] %vm554_vm5, %v1076_v21 }
 0x28d   :  { %v1082_v22 = vpop.permute.xlu1 %1081 }
 0x28e   :  { %1157 = vst.msk [vmem:[%s1785_s2 + $0x10] sm:$0x3f] %vm561_vm8, %v1082_v22 }
 0x291   :  { %v1088_v23 = vpop.permute.xlu1 %1087 }
 0x292   :  { %1158 = vst.msk [vmem:[%s1785_s2 + $0x10] sm:$0x3f] %vm568_vm2, %v1088_v23 }
 0x295   :  { %v1094_v24 = vpop.permute.xlu1 %1093 }
 0x296   :  { %1159 = vst.msk [vmem:[%s1785_s2 + $0x10] sm:$0x3f] %vm575_vm10, %v1094_v24 }
 0x297   :  { %1160 = vst.msk [vmem:[%s1785_s2 + $0x10] sm:$0x3f] %vm582_vm15, %v1100_v16 }
 0x299   :  { %v1106_v25 = vpop.permute.xlu1 %1105 }
 0x29a   :  { %1161 = vst.msk [vmem:[%s1785_s2 + $0x10] sm:$0x3f] %vm589_vm1, %v1106_v25 }
 0x29b   :  { %1162 = vst.msk [vmem:[%s1785_s2 + $0x18] sm:$0x3f] %vm591_vm12, %v1106_v25 }
 0x29d   :  { %v1113_v26 = vpop.permute.xlu1 %1112 }
 0x29e   :  { %1163 = vst.msk [vmem:[%s1785_s2 + $0x18] sm:$0x3f] %vm598_vm7, %v1113_v26 }

</bundles_post_ra>
